<compile_context>
chip_gen: v7x
topology: tpu7x:2x2x1
jax: 0.10.0
libtpu: 0.0.40
codegen_flags: <defaults>
</compile_context>

<pallas_src>
import numpy as np
import jax
import jax.numpy as jnp
from jax import lax
from jax.experimental import pallas as pl
from jax.experimental.pallas import tpu as pltpu

LANE = 128


def _round_up(n, m):
    return ((n + m - 1) // m) * m


# ----------------------------------------------------------------------------
# Fused kernel: shared-encoder LSTM followed by one decoder LSTM.
# Gate order follows PyTorch nn.LSTM: [i, f, g, o].
#
# Refs (grid over batch tiles; all weights are full blocks, constant index_map):
#   x_ref     : (T, Bt, F)      time-major input tile
#   wih_e_ref : (F,  4*Hp)      encoder W_ih^T   (gate-aligned on 128-lane boundaries, bf16)
#   whh_e_ref : (Hp, 4*Hp)      encoder W_hh^T   (bf16)
#   b_e_ref   : (1,  4*Hp)      encoder b_ih + b_hh (f32)
#   wih_d_ref : (Hp, 4*Sd)      decoder W_ih^T   (compact: gate g at cols [g*Sd,(g+1)*Sd), bf16)
#   whh_d_ref : (Sd, 4*Sd)      decoder W_hh^T   (compact, bf16)
#   b_d_ref   : (1,  4*Sd)      decoder b_ih + b_hh (f32)
#   out_ref   : (T, Bt, Fout)   decoded output, time-major, lane-padded to Fout
# ----------------------------------------------------------------------------
def fused_autoencoder_kernel(x_ref, wih_e_ref, whh_e_ref, b_e_ref,
                             wih_d_ref, whh_d_ref, b_d_ref, out_ref):
    T, Bt, F = x_ref.shape
    Hp = whh_e_ref.shape[0]        # encoder state width (128-padded, gate-aligned)
    Sd = whh_d_ref.shape[0]        # decoder state width (= real input_size, compact)
    bf16 = jnp.bfloat16
    f32 = jnp.float32

    # ---- Encoder: hoisted input projection for all T steps in ONE matmul ----
    x = x_ref[...].reshape(T * Bt, F).astype(bf16)
    wih_e = wih_e_ref[...]
    whh_e = whh_e_ref[...]
    gx = jnp.dot(x, wih_e, preferred_element_type=f32) + b_e_ref[...]   # (T*Bt, 4Hp) f32

    h = jnp.zeros((Bt, Hp), f32)
    c = jnp.zeros((Bt, Hp), f32)
    # Static unroll: T is small & known at trace time, so every gx slice below is a
    # static, contiguous (time-major) row slice.  For large T, switch this to
    # lax.fori_loop carrying (h, c) to bound vreg live ranges.
    for t in range(T):
        g = gx[t * Bt:(t + 1) * Bt, :] + jnp.dot(h.astype(bf16), whh_e,
                                                 preferred_element_type=f32)
        # Hp is a multiple of 128 -> whole-vreg gate slices (no cross-lane shuffles).
        i_g = jax.nn.sigmoid(g[:, 0 * Hp:1 * Hp])
        f_g = jax.nn.sigmoid(g[:, 1 * Hp:2 * Hp])
        g_g = jnp.tanh(g[:, 2 * Hp:3 * Hp])
        o_g = jax.nn.sigmoid(g[:, 3 * Hp:4 * Hp])
        c = f_g * c + i_g * g_g
        h = o_g * jnp.tanh(c)

    encoded = h.astype(bf16)       # (Bt, Hp); padded lanes are exactly zero

    # ---- Decoder: input is `encoded` at every step -> project it exactly once ----
    whh_d = whh_d_ref[...]
    gxd = jnp.dot(encoded, wih_d_ref[...],
                  preferred_element_type=f32) + b_d_ref[...]            # (Bt, 4*Sd) f32

    # Zero the lane-padded output block once (dense full-block store); padded lanes
    # stay zero and are sliced off in the wrapper.
    out_ref[...] = jnp.zeros(out_ref.shape, out_ref.dtype)

    hd = jnp.zeros((Bt, Sd), f32)
    cd = jnp.zeros((Bt, Sd), f32)
    for t in range(T):
        g = gxd + jnp.dot(hd.astype(bf16), whh_d, preferred_element_type=f32)
        i_g = jax.nn.sigmoid(g[:, 0 * Sd:1 * Sd])
        f_g = jax.nn.sigmoid(g[:, 1 * Sd:2 * Sd])
        g_g = jnp.tanh(g[:, 2 * Sd:3 * Sd])
        o_g = jax.nn.sigmoid(g[:, 3 * Sd:4 * Sd])
        cd = f_g * cd + i_g * g_g
        hd = o_g * jnp.tanh(cd)
        # Write into the VMEM output block (not HBM); this store is not a dependency of
        # the recurrence, so it schedules off the critical path.  The HBM writeback of
        # the whole (T, Bt, Fout) block is a single dense DMA done by the pipeline.
        out_ref[t, :, 0:Sd] = hd.astype(out_ref.dtype)


def _pick_batch_tile(B, num_batch_tiles):
    """Batch tile for the grid.  Tiles must be a multiple of 8 rows (or the full batch)
    to satisfy the (8, 128) block constraint on the (TB, F)/(TB, Fout) trailing dims."""
    if num_batch_tiles <= 1 or B % num_batch_tiles != 0:
        return B
    tb = B // num_batch_tiles
    if tb != B and tb % 8 != 0:
        return B
    return tb


def _vmem_bytes_estimate(T, TB, F, Hp, Sd, Fout):
    f32b, bf16b = 4, 2
    blocks = (T * TB * F * f32b                      # x tile
              + T * TB * Fout * f32b                 # out tile
              + F * 4 * Hp * bf16b                   # encoder W_ih^T
              + Hp * 4 * Hp * bf16b                  # encoder W_hh^T
              + 4 * Hp * f32b                        # encoder bias
              + Hp * 4 * Sd * bf16b                  # decoder W_ih^T
              + Sd * 4 * Sd * bf16b                  # decoder W_hh^T
              + 4 * Sd * f32b)                       # decoder bias
    gx = T * TB * 4 * Hp * f32b                      # hoisted encoder projection
    return 2 * blocks + gx                           # inputs/outputs are double-buffered


def fused_autoencoder(x, enc_p, dec_p, *, num_batch_tiles=1):
    """x: (B, T, F) batch-first.  enc_p / dec_p: packed kernel params (bf16 weights).
    Set num_batch_tiles=2 on v7x (2 TensorCores/chip) for large batches."""
    B, T, F = x.shape
    Hp = enc_p["whh"].shape[0]
    Sd = dec_p["whh"].shape[0]
    Fout = _round_up(Sd, LANE)
    TB = _pick_batch_tile(B, num_batch_tiles)

    # Time-major input: makes the hoisted per-step gx slices contiguous in the kernel.
    x_tm = jnp.transpose(x, (1, 0, 2))               # (T, B, F)

    grid_spec = pltpu.PrefetchScalarGridSpec(
        num_scalar_prefetch=0,
        grid=(B // TB,),
        in_specs=[
            pl.BlockSpec((T, TB, F), lambda b: (0, b, 0)),
            pl.BlockSpec((F, 4 * Hp), lambda b: (0, 0)),
            pl.BlockSpec((Hp, 4 * Hp), lambda b: (0, 0)),
            pl.BlockSpec((1, 4 * Hp), lambda b: (0, 0)),
            pl.BlockSpec((Hp, 4 * Sd), lambda b: (0, 0)),
            pl.BlockSpec((Sd, 4 * Sd), lambda b: (0, 0)),
            pl.BlockSpec((1, 4 * Sd), lambda b: (0, 0)),
        ],
        out_specs=pl.BlockSpec((T, TB, Fout), lambda b: (0, b, 0)),
    )

    vmem_limit = int(min(64 * 2 ** 20,
                         _vmem_bytes_estimate(T, TB, F, Hp, Sd, Fout) + 16 * 2 ** 20))

    out_pad = pl.pallas_call(
        fused_autoencoder_kernel,
        out_shape=jax.ShapeDtypeStruct((T, B, Fout), jnp.float32),
        grid_spec=grid_spec,
        compiler_params=pltpu.CompilerParams(
            dimension_semantics=("parallel",),
            vmem_limit_bytes=vmem_limit),
    )(x_tm, enc_p["wih"], enc_p["whh"], enc_p["b"],
      dec_p["wih"], dec_p["whh"], dec_p["b"])

    # (T, B, Fout) -> (B, T, F): cheap layout plumbing outside the kernel.
    return jnp.transpose(out_pad, (1, 0, 2))[:, :, :F]


# ----------------------------------------------------------------------------
# Parameter construction (PyTorch-style uniform(-k, k), k = 1/sqrt(hidden)).
# ----------------------------------------------------------------------------
def init_lstm_raw(key, in_size, hid_size):
    k = 1.0 / np.sqrt(hid_size)
    k1, k2, k3, k4 = jax.random.split(key, 4)
    w_ih = jax.random.uniform(k1, (4 * hid_size, in_size), jnp.float32, -k, k)
    w_hh = jax.random.uniform(k2, (4 * hid_size, hid_size), jnp.float32, -k, k)
    b_ih = jax.random.uniform(k3, (4 * hid_size,), jnp.float32, -k, k)
    b_hh = jax.random.uniform(k4, (4 * hid_size,), jnp.float32, -k, k)
    return {"w_ih_t": w_ih.T, "w_hh_t": w_hh.T, "b": b_ih + b_hh}


def pack_lstm(raw, in_size, hid_size, in_rows, state_rows, gate_stride, total_cols):
    """Pack transposed LSTM weights so gate g lives at columns
    [g*gate_stride, g*gate_stride + hid_size).  Rows beyond the real in/hidden size are
    zero, so zero-padded input/state lanes contribute exactly zero.  Weights are stored
    in bfloat16 (MXU-native); biases in float32."""
    wih = np.zeros((in_rows, total_cols), np.float32)
    whh = np.zeros((state_rows, total_cols), np.float32)
    b = np.zeros((1, total_cols), np.float32)
    w_ih_t = np.asarray(raw["w_ih_t"])
    w_hh_t = np.asarray(raw["w_hh_t"])
    b_raw = np.asarray(raw["b"])
    for g in range(4):
        src = slice(g * hid_size, (g + 1) * hid_size)
        dst = slice(g * gate_stride, g * gate_stride + hid_size)
        wih[:in_size, dst] = w_ih_t[:, src]
        whh[:hid_size, dst] = w_hh_t[:, src]
        b[0, dst] = b_raw[src]
    return {"wih": jnp.asarray(wih, jnp.bfloat16),
            "whh": jnp.asarray(whh, jnp.bfloat16),
            "b": jnp.asarray(b, jnp.float32)}


class AutoencoderPallas:
    """JAX/Pallas port of the PyTorch `Autoencoder` module (batch_first LSTMs)."""

    def __init__(self, input_size, hidden_size, num_estuaries, key):
        keys = jax.random.split(key, num_estuaries + 1)
        Hp = _round_up(hidden_size, LANE)
        self.input_size = input_size
        self.hidden_size = hidden_size

        # Raw (unpadded, f32) params for the pure-JAX reference path.
        self.enc_raw = init_lstm_raw(keys[0], input_size, hidden_size)
        self.dec_raw = [init_lstm_raw(keys[1 + d], hidden_size, input_size)
                        for d in range(num_estuaries)]

        # Encoder: gate-aligned to 128-lane (Hp) boundaries -> whole-vreg gate slices.
        self.enc = pack_lstm(self.enc_raw, in_size=input_size, hid_size=hidden_size,
                             in_rows=input_size, state_rows=Hp,
                             gate_stride=Hp, total_cols=4 * Hp)
        # Decoder: compact layout at the real hidden width (= input_size); whh is
        # (F, 4F) instead of a mostly-zero (128, 512) -> 4x less per-step MXU work.
        self.decs = [pack_lstm(r, in_size=hidden_size, hid_size=input_size,
                               in_rows=Hp, state_rows=input_size,
                               gate_stride=input_size, total_cols=4 * input_size)
                     for r in self.dec_raw]

    def __call__(self, x, estuary_idx, *, num_batch_tiles=1):
        # estuary_idx is static (mirrors indexing a ModuleList in PyTorch).
        return fused_autoencoder(x, self.enc, self.decs[estuary_idx],
                                 num_batch_tiles=num_batch_tiles)

    # Pure-JAX reference (unpadded f32), matching PyTorch Autoencoder.forward.
    def reference(self, x, estuary_idx):
        def lstm(x_tm, p):
            H = p["w_hh_t"].shape[0]
            _, B, _ = x_tm.shape

            def step(carry, x_t):
                h, c = carry
                gts = x_t @ p["w_ih_t"] + h @ p["w_hh_t"] + p["b"]
                i_g = jax.nn.sigmoid(gts[:, 0 * H:1 * H])
                f_g = jax.nn.sigmoid(gts[:, 1 * H:2 * H])
                g_g = jnp.tanh(gts[:, 2 * H:3 * H])
                o_g = jax.nn.sigmoid(gts[:, 3 * H:4 * H])
                c = f_g * c + i_g * g_g
                h = o_g * jnp.tanh(c)
                return (h, c), h

            (h, _), ys = lax.scan(step, (jnp.zeros((B, H)), jnp.zeros((B, H))), x_tm)
            return ys, h

        B, T, F = x.shape
        x_tm = jnp.transpose(x, (1, 0, 2))                      # (T, B, F)
        _, encoded = lstm(x_tm, self.enc_raw)                   # (B, H)
        dec_in = jnp.broadcast_to(encoded[None], (T,) + encoded.shape)
        y, _ = lstm(dec_in, self.dec_raw[estuary_idx])          # (T, B, F)
        return jnp.transpose(y, (1, 0, 2))                      # (B, T, F)


if __name__ == "__main__":
    # Small shapes consistent with the module's forward.
    batch = 2
    seq_len = 8
    input_size = 8
    hidden_size = 64
    num_estuaries = 3
    estuary_idx = 1

    key = jax.random.PRNGKey(0)
    k_param, k_data = jax.random.split(key)

    model = AutoencoderPallas(input_size, hidden_size, num_estuaries, k_param)
    x = jax.random.normal(k_data, (batch, seq_len, input_size), jnp.float32)

    decoded = jax.block_until_ready(model(x, estuary_idx))

    expected = model.reference(x, estuary_idx)
    # bf16 MXU operands (f32 accumulation / state math) -> loosened tolerance.
    np.testing.assert_allclose(np.asarray(decoded), np.asarray(expected),
                               rtol=2e-2, atol=2e-2)
    assert decoded.shape == (batch, seq_len, input_size)

    print("KERNEL_OK")
</pallas_src>

<mosaic_0001>
module attributes {stable_mosaic.version = 11 : i64} {
  func.func @fused_autoencoder_kernel(%arg0: i32, %arg1: memref<8x2x8xf32, #tpu.memory_space<vmem>>, %arg2: memref<8x512xbf16, #tpu.memory_space<vmem>>, %arg3: memref<128x512xbf16, #tpu.memory_space<vmem>>, %arg4: memref<1x512xf32, #tpu.memory_space<vmem>>, %arg5: memref<128x32xbf16, #tpu.memory_space<vmem>>, %arg6: memref<8x32xbf16, #tpu.memory_space<vmem>>, %arg7: memref<1x32xf32, #tpu.memory_space<vmem>>, %arg8: memref<8x2x128xf32, #tpu.memory_space<vmem>>) attributes {dimension_semantics = [#tpu.dimension_semantics<parallel>], iteration_bounds = array<i64: 1>, scalar_prefetch = 0 : i64, scratch_operands = 0 : i64, tpu.core_type = #tpu.core_type<tc>, window_params = [{transform_indices = @transform_0, window_bounds = array<i64: 8, 2, 8>}, {pipeline_mode = #tpu.pipeline_mode<synchronous>, transform_indices = @transform_1, window_bounds = array<i64: 8, 512>}, {pipeline_mode = #tpu.pipeline_mode<synchronous>, transform_indices = @transform_2, window_bounds = array<i64: 128, 512>}, {pipeline_mode = #tpu.pipeline_mode<synchronous>, transform_indices = @transform_3, window_bounds = array<i64: 1, 512>}, {pipeline_mode = #tpu.pipeline_mode<synchronous>, transform_indices = @transform_4, window_bounds = array<i64: 128, 32>}, {pipeline_mode = #tpu.pipeline_mode<synchronous>, transform_indices = @transform_5, window_bounds = array<i64: 8, 32>}, {pipeline_mode = #tpu.pipeline_mode<synchronous>, transform_indices = @transform_6, window_bounds = array<i64: 1, 32>}, {transform_indices = @transform_7, window_bounds = array<i64: 8, 2, 128>}]} {
    %c0 = arith.constant 0 : index
    %c0_0 = arith.constant 0 : index
    %c0_1 = arith.constant 0 : index
    %0 = vector.load %arg1[%c0, %c0_0, %c0_1] : memref<8x2x8xf32, #tpu.memory_space<vmem>>, vector<8x2x8xf32>
    %1 = vector.shape_cast %0 : vector<8x2x8xf32> to vector<16x8xf32>
    %2 = arith.truncf %1 : vector<16x8xf32> to vector<16x8xbf16>
    %c0_2 = arith.constant 0 : index
    %c0_3 = arith.constant 0 : index
    %3 = vector.load %arg2[%c0_2, %c0_3] : memref<8x512xbf16, #tpu.memory_space<vmem>>, vector<8x512xbf16>
    %c0_4 = arith.constant 0 : index
    %c0_5 = arith.constant 0 : index
    %4 = vector.load %arg3[%c0_4, %c0_5] : memref<128x512xbf16, #tpu.memory_space<vmem>>, vector<128x512xbf16>
    %cst = arith.constant dense<0.000000e+00> : vector<16x512xf32>
    %5 = tpu.matmul %2, %3, %cst {dimension_numbers = #tpu.dot_dimension_numbers<[1], [0], [0], [1], [0, 0, 1, 1], [], []>} : vector<16x8xbf16>, vector<8x512xbf16>, vector<16x512xf32> -> vector<16x512xf32>
    %c0_6 = arith.constant 0 : index
    %c0_7 = arith.constant 0 : index
    %6 = vector.load %arg4[%c0_6, %c0_7] : memref<1x512xf32, #tpu.memory_space<vmem>>, vector<1x512xf32>
    %7 = vector.broadcast %6 : vector<1x512xf32> to vector<16x512xf32>
    %8 = arith.addf %5, %7 : vector<16x512xf32>
    %cst_8 = arith.constant 0.000000e+00 : f32
    %9 = vector.broadcast %cst_8 : f32 to vector<2x128xf32>
    %cst_9 = arith.constant 0.000000e+00 : f32
    %10 = vector.broadcast %cst_9 : f32 to vector<2x128xf32>
    %11 = vector.extract_strided_slice %8 {offsets = [0, 0], sizes = [2, 512], strides = [1, 1]} : vector<16x512xf32> to vector<2x512xf32>
    %12 = arith.truncf %9 : vector<2x128xf32> to vector<2x128xbf16>
    %cst_10 = arith.constant dense<0.000000e+00> : vector<2x512xf32>
    %13 = tpu.matmul %12, %4, %cst_10 {dimension_numbers = #tpu.dot_dimension_numbers<[1], [0], [0], [1], [0, 0, 1, 1], [], []>} : vector<2x128xbf16>, vector<128x512xbf16>, vector<2x512xf32> -> vector<2x512xf32>
    %14 = arith.addf %11, %13 : vector<2x512xf32>
    %15 = vector.extract_strided_slice %14 {offsets = [0, 0], sizes = [2, 128], strides = [1, 1]} : vector<2x512xf32> to vector<2x128xf32>
    %16 = arith.negf %15 : vector<2x128xf32>
    %17 = math.exp %16 : vector<2x128xf32>
    %cst_11 = arith.constant 1.000000e+00 : f32
    %18 = vector.broadcast %cst_11 : f32 to vector<2x128xf32>
    %19 = arith.addf %18, %17 : vector<2x128xf32>
    %20 = arith.divf %18, %19 : vector<2x128xf32>
    %21 = vector.extract_strided_slice %14 {offsets = [0, 128], sizes = [2, 128], strides = [1, 1]} : vector<2x512xf32> to vector<2x128xf32>
    %22 = arith.negf %21 : vector<2x128xf32>
    %23 = math.exp %22 : vector<2x128xf32>
    %cst_12 = arith.constant 1.000000e+00 : f32
    %24 = vector.broadcast %cst_12 : f32 to vector<2x128xf32>
    %25 = arith.addf %24, %23 : vector<2x128xf32>
    %26 = arith.divf %24, %25 : vector<2x128xf32>
    %27 = vector.extract_strided_slice %14 {offsets = [0, 256], sizes = [2, 128], strides = [1, 1]} : vector<2x512xf32> to vector<2x128xf32>
    %28 = math.tanh %27 : vector<2x128xf32>
    %29 = vector.extract_strided_slice %14 {offsets = [0, 384], sizes = [2, 128], strides = [1, 1]} : vector<2x512xf32> to vector<2x128xf32>
    %30 = arith.negf %29 : vector<2x128xf32>
    %31 = math.exp %30 : vector<2x128xf32>
    %cst_13 = arith.constant 1.000000e+00 : f32
    %32 = vector.broadcast %cst_13 : f32 to vector<2x128xf32>
    %33 = arith.addf %32, %31 : vector<2x128xf32>
    %34 = arith.divf %32, %33 : vector<2x128xf32>
    %35 = arith.mulf %26, %10 : vector<2x128xf32>
    %36 = arith.mulf %20, %28 : vector<2x128xf32>
    %37 = arith.addf %35, %36 : vector<2x128xf32>
    %38 = math.tanh %37 : vector<2x128xf32>
    %39 = arith.mulf %34, %38 : vector<2x128xf32>
    %40 = vector.extract_strided_slice %8 {offsets = [2, 0], sizes = [2, 512], strides = [1, 1]} : vector<16x512xf32> to vector<2x512xf32>
    %41 = arith.truncf %39 : vector<2x128xf32> to vector<2x128xbf16>
    %cst_14 = arith.constant dense<0.000000e+00> : vector<2x512xf32>
    %42 = tpu.matmul %41, %4, %cst_14 {dimension_numbers = #tpu.dot_dimension_numbers<[1], [0], [0], [1], [0, 0, 1, 1], [], []>} : vector<2x128xbf16>, vector<128x512xbf16>, vector<2x512xf32> -> vector<2x512xf32>
    %43 = arith.addf %40, %42 : vector<2x512xf32>
    %44 = vector.extract_strided_slice %43 {offsets = [0, 0], sizes = [2, 128], strides = [1, 1]} : vector<2x512xf32> to vector<2x128xf32>
    %45 = arith.negf %44 : vector<2x128xf32>
    %46 = math.exp %45 : vector<2x128xf32>
    %cst_15 = arith.constant 1.000000e+00 : f32
    %47 = vector.broadcast %cst_15 : f32 to vector<2x128xf32>
    %48 = arith.addf %47, %46 : vector<2x128xf32>
    %49 = arith.divf %47, %48 : vector<2x128xf32>
    %50 = vector.extract_strided_slice %43 {offsets = [0, 128], sizes = [2, 128], strides = [1, 1]} : vector<2x512xf32> to vector<2x128xf32>
    %51 = arith.negf %50 : vector<2x128xf32>
    %52 = math.exp %51 : vector<2x128xf32>
    %cst_16 = arith.constant 1.000000e+00 : f32
    %53 = vector.broadcast %cst_16 : f32 to vector<2x128xf32>
    %54 = arith.addf %53, %52 : vector<2x128xf32>
    %55 = arith.divf %53, %54 : vector<2x128xf32>
    %56 = vector.extract_strided_slice %43 {offsets = [0, 256], sizes = [2, 128], strides = [1, 1]} : vector<2x512xf32> to vector<2x128xf32>
    %57 = math.tanh %56 : vector<2x128xf32>
    %58 = vector.extract_strided_slice %43 {offsets = [0, 384], sizes = [2, 128], strides = [1, 1]} : vector<2x512xf32> to vector<2x128xf32>
    %59 = arith.negf %58 : vector<2x128xf32>
    %60 = math.exp %59 : vector<2x128xf32>
    %cst_17 = arith.constant 1.000000e+00 : f32
    %61 = vector.broadcast %cst_17 : f32 to vector<2x128xf32>
    %62 = arith.addf %61, %60 : vector<2x128xf32>
    %63 = arith.divf %61, %62 : vector<2x128xf32>
    %64 = arith.mulf %55, %37 : vector<2x128xf32>
    %65 = arith.mulf %49, %57 : vector<2x128xf32>
    %66 = arith.addf %64, %65 : vector<2x128xf32>
    %67 = math.tanh %66 : vector<2x128xf32>
    %68 = arith.mulf %63, %67 : vector<2x128xf32>
    %69 = vector.extract_strided_slice %8 {offsets = [4, 0], sizes = [2, 512], strides = [1, 1]} : vector<16x512xf32> to vector<2x512xf32>
    %70 = arith.truncf %68 : vector<2x128xf32> to vector<2x128xbf16>
    %cst_18 = arith.constant dense<0.000000e+00> : vector<2x512xf32>
    %71 = tpu.matmul %70, %4, %cst_18 {dimension_numbers = #tpu.dot_dimension_numbers<[1], [0], [0], [1], [0, 0, 1, 1], [], []>} : vector<2x128xbf16>, vector<128x512xbf16>, vector<2x512xf32> -> vector<2x512xf32>
    %72 = arith.addf %69, %71 : vector<2x512xf32>
    %73 = vector.extract_strided_slice %72 {offsets = [0, 0], sizes = [2, 128], strides = [1, 1]} : vector<2x512xf32> to vector<2x128xf32>
    %74 = arith.negf %73 : vector<2x128xf32>
    %75 = math.exp %74 : vector<2x128xf32>
    %cst_19 = arith.constant 1.000000e+00 : f32
    %76 = vector.broadcast %cst_19 : f32 to vector<2x128xf32>
    %77 = arith.addf %76, %75 : vector<2x128xf32>
    %78 = arith.divf %76, %77 : vector<2x128xf32>
    %79 = vector.extract_strided_slice %72 {offsets = [0, 128], sizes = [2, 128], strides = [1, 1]} : vector<2x512xf32> to vector<2x128xf32>
    %80 = arith.negf %79 : vector<2x128xf32>
    %81 = math.exp %80 : vector<2x128xf32>
    %cst_20 = arith.constant 1.000000e+00 : f32
    %82 = vector.broadcast %cst_20 : f32 to vector<2x128xf32>
    %83 = arith.addf %82, %81 : vector<2x128xf32>
    %84 = arith.divf %82, %83 : vector<2x128xf32>
    %85 = vector.extract_strided_slice %72 {offsets = [0, 256], sizes = [2, 128], strides = [1, 1]} : vector<2x512xf32> to vector<2x128xf32>
    %86 = math.tanh %85 : vector<2x128xf32>
    %87 = vector.extract_strided_slice %72 {offsets = [0, 384], sizes = [2, 128], strides = [1, 1]} : vector<2x512xf32> to vector<2x128xf32>
    %88 = arith.negf %87 : vector<2x128xf32>
    %89 = math.exp %88 : vector<2x128xf32>
    %cst_21 = arith.constant 1.000000e+00 : f32
    %90 = vector.broadcast %cst_21 : f32 to vector<2x128xf32>
    %91 = arith.addf %90, %89 : vector<2x128xf32>
    %92 = arith.divf %90, %91 : vector<2x128xf32>
    %93 = arith.mulf %84, %66 : vector<2x128xf32>
    %94 = arith.mulf %78, %86 : vector<2x128xf32>
    %95 = arith.addf %93, %94 : vector<2x128xf32>
    %96 = math.tanh %95 : vector<2x128xf32>
    %97 = arith.mulf %92, %96 : vector<2x128xf32>
    %98 = vector.extract_strided_slice %8 {offsets = [6, 0], sizes = [2, 512], strides = [1, 1]} : vector<16x512xf32> to vector<2x512xf32>
    %99 = arith.truncf %97 : vector<2x128xf32> to vector<2x128xbf16>
    %cst_22 = arith.constant dense<0.000000e+00> : vector<2x512xf32>
    %100 = tpu.matmul %99, %4, %cst_22 {dimension_numbers = #tpu.dot_dimension_numbers<[1], [0], [0], [1], [0, 0, 1, 1], [], []>} : vector<2x128xbf16>, vector<128x512xbf16>, vector<2x512xf32> -> vector<2x512xf32>
    %101 = arith.addf %98, %100 : vector<2x512xf32>
    %102 = vector.extract_strided_slice %101 {offsets = [0, 0], sizes = [2, 128], strides = [1, 1]} : vector<2x512xf32> to vector<2x128xf32>
    %103 = arith.negf %102 : vector<2x128xf32>
    %104 = math.exp %103 : vector<2x128xf32>
    %cst_23 = arith.constant 1.000000e+00 : f32
    %105 = vector.broadcast %cst_23 : f32 to vector<2x128xf32>
    %106 = arith.addf %105, %104 : vector<2x128xf32>
    %107 = arith.divf %105, %106 : vector<2x128xf32>
    %108 = vector.extract_strided_slice %101 {offsets = [0, 128], sizes = [2, 128], strides = [1, 1]} : vector<2x512xf32> to vector<2x128xf32>
    %109 = arith.negf %108 : vector<2x128xf32>
    %110 = math.exp %109 : vector<2x128xf32>
    %cst_24 = arith.constant 1.000000e+00 : f32
    %111 = vector.broadcast %cst_24 : f32 to vector<2x128xf32>
    %112 = arith.addf %111, %110 : vector<2x128xf32>
    %113 = arith.divf %111, %112 : vector<2x128xf32>
    %114 = vector.extract_strided_slice %101 {offsets = [0, 256], sizes = [2, 128], strides = [1, 1]} : vector<2x512xf32> to vector<2x128xf32>
    %115 = math.tanh %114 : vector<2x128xf32>
    %116 = vector.extract_strided_slice %101 {offsets = [0, 384], sizes = [2, 128], strides = [1, 1]} : vector<2x512xf32> to vector<2x128xf32>
    %117 = arith.negf %116 : vector<2x128xf32>
    %118 = math.exp %117 : vector<2x128xf32>
    %cst_25 = arith.constant 1.000000e+00 : f32
    %119 = vector.broadcast %cst_25 : f32 to vector<2x128xf32>
    %120 = arith.addf %119, %118 : vector<2x128xf32>
    %121 = arith.divf %119, %120 : vector<2x128xf32>
    %122 = arith.mulf %113, %95 : vector<2x128xf32>
    %123 = arith.mulf %107, %115 : vector<2x128xf32>
    %124 = arith.addf %122, %123 : vector<2x128xf32>
    %125 = math.tanh %124 : vector<2x128xf32>
    %126 = arith.mulf %121, %125 : vector<2x128xf32>
    %127 = vector.extract_strided_slice %8 {offsets = [8, 0], sizes = [2, 512], strides = [1, 1]} : vector<16x512xf32> to vector<2x512xf32>
    %128 = arith.truncf %126 : vector<2x128xf32> to vector<2x128xbf16>
    %cst_26 = arith.constant dense<0.000000e+00> : vector<2x512xf32>
    %129 = tpu.matmul %128, %4, %cst_26 {dimension_numbers = #tpu.dot_dimension_numbers<[1], [0], [0], [1], [0, 0, 1, 1], [], []>} : vector<2x128xbf16>, vector<128x512xbf16>, vector<2x512xf32> -> vector<2x512xf32>
    %130 = arith.addf %127, %129 : vector<2x512xf32>
    %131 = vector.extract_strided_slice %130 {offsets = [0, 0], sizes = [2, 128], strides = [1, 1]} : vector<2x512xf32> to vector<2x128xf32>
    %132 = arith.negf %131 : vector<2x128xf32>
    %133 = math.exp %132 : vector<2x128xf32>
    %cst_27 = arith.constant 1.000000e+00 : f32
    %134 = vector.broadcast %cst_27 : f32 to vector<2x128xf32>
    %135 = arith.addf %134, %133 : vector<2x128xf32>
    %136 = arith.divf %134, %135 : vector<2x128xf32>
    %137 = vector.extract_strided_slice %130 {offsets = [0, 128], sizes = [2, 128], strides = [1, 1]} : vector<2x512xf32> to vector<2x128xf32>
    %138 = arith.negf %137 : vector<2x128xf32>
    %139 = math.exp %138 : vector<2x128xf32>
    %cst_28 = arith.constant 1.000000e+00 : f32
    %140 = vector.broadcast %cst_28 : f32 to vector<2x128xf32>
    %141 = arith.addf %140, %139 : vector<2x128xf32>
    %142 = arith.divf %140, %141 : vector<2x128xf32>
    %143 = vector.extract_strided_slice %130 {offsets = [0, 256], sizes = [2, 128], strides = [1, 1]} : vector<2x512xf32> to vector<2x128xf32>
    %144 = math.tanh %143 : vector<2x128xf32>
    %145 = vector.extract_strided_slice %130 {offsets = [0, 384], sizes = [2, 128], strides = [1, 1]} : vector<2x512xf32> to vector<2x128xf32>
    %146 = arith.negf %145 : vector<2x128xf32>
    %147 = math.exp %146 : vector<2x128xf32>
    %cst_29 = arith.constant 1.000000e+00 : f32
    %148 = vector.broadcast %cst_29 : f32 to vector<2x128xf32>
    %149 = arith.addf %148, %147 : vector<2x128xf32>
    %150 = arith.divf %148, %149 : vector<2x128xf32>
    %151 = arith.mulf %142, %124 : vector<2x128xf32>
    %152 = arith.mulf %136, %144 : vector<2x128xf32>
    %153 = arith.addf %151, %152 : vector<2x128xf32>
    %154 = math.tanh %153 : vector<2x128xf32>
    %155 = arith.mulf %150, %154 : vector<2x128xf32>
    %156 = vector.extract_strided_slice %8 {offsets = [10, 0], sizes = [2, 512], strides = [1, 1]} : vector<16x512xf32> to vector<2x512xf32>
    %157 = arith.truncf %155 : vector<2x128xf32> to vector<2x128xbf16>
    %cst_30 = arith.constant dense<0.000000e+00> : vector<2x512xf32>
    %158 = tpu.matmul %157, %4, %cst_30 {dimension_numbers = #tpu.dot_dimension_numbers<[1], [0], [0], [1], [0, 0, 1, 1], [], []>} : vector<2x128xbf16>, vector<128x512xbf16>, vector<2x512xf32> -> vector<2x512xf32>
    %159 = arith.addf %156, %158 : vector<2x512xf32>
    %160 = vector.extract_strided_slice %159 {offsets = [0, 0], sizes = [2, 128], strides = [1, 1]} : vector<2x512xf32> to vector<2x128xf32>
    %161 = arith.negf %160 : vector<2x128xf32>
    %162 = math.exp %161 : vector<2x128xf32>
    %cst_31 = arith.constant 1.000000e+00 : f32
    %163 = vector.broadcast %cst_31 : f32 to vector<2x128xf32>
    %164 = arith.addf %163, %162 : vector<2x128xf32>
    %165 = arith.divf %163, %164 : vector<2x128xf32>
    %166 = vector.extract_strided_slice %159 {offsets = [0, 128], sizes = [2, 128], strides = [1, 1]} : vector<2x512xf32> to vector<2x128xf32>
    %167 = arith.negf %166 : vector<2x128xf32>
    %168 = math.exp %167 : vector<2x128xf32>
    %cst_32 = arith.constant 1.000000e+00 : f32
    %169 = vector.broadcast %cst_32 : f32 to vector<2x128xf32>
    %170 = arith.addf %169, %168 : vector<2x128xf32>
    %171 = arith.divf %169, %170 : vector<2x128xf32>
    %172 = vector.extract_strided_slice %159 {offsets = [0, 256], sizes = [2, 128], strides = [1, 1]} : vector<2x512xf32> to vector<2x128xf32>
    %173 = math.tanh %172 : vector<2x128xf32>
    %174 = vector.extract_strided_slice %159 {offsets = [0, 384], sizes = [2, 128], strides = [1, 1]} : vector<2x512xf32> to vector<2x128xf32>
    %175 = arith.negf %174 : vector<2x128xf32>
    %176 = math.exp %175 : vector<2x128xf32>
    %cst_33 = arith.constant 1.000000e+00 : f32
    %177 = vector.broadcast %cst_33 : f32 to vector<2x128xf32>
    %178 = arith.addf %177, %176 : vector<2x128xf32>
    %179 = arith.divf %177, %178 : vector<2x128xf32>
    %180 = arith.mulf %171, %153 : vector<2x128xf32>
    %181 = arith.mulf %165, %173 : vector<2x128xf32>
    %182 = arith.addf %180, %181 : vector<2x128xf32>
    %183 = math.tanh %182 : vector<2x128xf32>
    %184 = arith.mulf %179, %183 : vector<2x128xf32>
    %185 = vector.extract_strided_slice %8 {offsets = [12, 0], sizes = [2, 512], strides = [1, 1]} : vector<16x512xf32> to vector<2x512xf32>
    %186 = arith.truncf %184 : vector<2x128xf32> to vector<2x128xbf16>
    %cst_34 = arith.constant dense<0.000000e+00> : vector<2x512xf32>
    %187 = tpu.matmul %186, %4, %cst_34 {dimension_numbers = #tpu.dot_dimension_numbers<[1], [0], [0], [1], [0, 0, 1, 1], [], []>} : vector<2x128xbf16>, vector<128x512xbf16>, vector<2x512xf32> -> vector<2x512xf32>
    %188 = arith.addf %185, %187 : vector<2x512xf32>
    %189 = vector.extract_strided_slice %188 {offsets = [0, 0], sizes = [2, 128], strides = [1, 1]} : vector<2x512xf32> to vector<2x128xf32>
    %190 = arith.negf %189 : vector<2x128xf32>
    %191 = math.exp %190 : vector<2x128xf32>
    %cst_35 = arith.constant 1.000000e+00 : f32
    %192 = vector.broadcast %cst_35 : f32 to vector<2x128xf32>
    %193 = arith.addf %192, %191 : vector<2x128xf32>
    %194 = arith.divf %192, %193 : vector<2x128xf32>
    %195 = vector.extract_strided_slice %188 {offsets = [0, 128], sizes = [2, 128], strides = [1, 1]} : vector<2x512xf32> to vector<2x128xf32>
    %196 = arith.negf %195 : vector<2x128xf32>
    %197 = math.exp %196 : vector<2x128xf32>
    %cst_36 = arith.constant 1.000000e+00 : f32
    %198 = vector.broadcast %cst_36 : f32 to vector<2x128xf32>
    %199 = arith.addf %198, %197 : vector<2x128xf32>
    %200 = arith.divf %198, %199 : vector<2x128xf32>
    %201 = vector.extract_strided_slice %188 {offsets = [0, 256], sizes = [2, 128], strides = [1, 1]} : vector<2x512xf32> to vector<2x128xf32>
    %202 = math.tanh %201 : vector<2x128xf32>
    %203 = vector.extract_strided_slice %188 {offsets = [0, 384], sizes = [2, 128], strides = [1, 1]} : vector<2x512xf32> to vector<2x128xf32>
    %204 = arith.negf %203 : vector<2x128xf32>
    %205 = math.exp %204 : vector<2x128xf32>
    %cst_37 = arith.constant 1.000000e+00 : f32
    %206 = vector.broadcast %cst_37 : f32 to vector<2x128xf32>
    %207 = arith.addf %206, %205 : vector<2x128xf32>
    %208 = arith.divf %206, %207 : vector<2x128xf32>
    %209 = arith.mulf %200, %182 : vector<2x128xf32>
    %210 = arith.mulf %194, %202 : vector<2x128xf32>
    %211 = arith.addf %209, %210 : vector<2x128xf32>
    %212 = math.tanh %211 : vector<2x128xf32>
    %213 = arith.mulf %208, %212 : vector<2x128xf32>
    %214 = vector.extract_strided_slice %8 {offsets = [14, 0], sizes = [2, 512], strides = [1, 1]} : vector<16x512xf32> to vector<2x512xf32>
    %215 = arith.truncf %213 : vector<2x128xf32> to vector<2x128xbf16>
    %cst_38 = arith.constant dense<0.000000e+00> : vector<2x512xf32>
    %216 = tpu.matmul %215, %4, %cst_38 {dimension_numbers = #tpu.dot_dimension_numbers<[1], [0], [0], [1], [0, 0, 1, 1], [], []>} : vector<2x128xbf16>, vector<128x512xbf16>, vector<2x512xf32> -> vector<2x512xf32>
    %217 = arith.addf %214, %216 : vector<2x512xf32>
    %218 = vector.extract_strided_slice %217 {offsets = [0, 0], sizes = [2, 128], strides = [1, 1]} : vector<2x512xf32> to vector<2x128xf32>
    %219 = arith.negf %218 : vector<2x128xf32>
    %220 = math.exp %219 : vector<2x128xf32>
    %cst_39 = arith.constant 1.000000e+00 : f32
    %221 = vector.broadcast %cst_39 : f32 to vector<2x128xf32>
    %222 = arith.addf %221, %220 : vector<2x128xf32>
    %223 = arith.divf %221, %222 : vector<2x128xf32>
    %224 = vector.extract_strided_slice %217 {offsets = [0, 128], sizes = [2, 128], strides = [1, 1]} : vector<2x512xf32> to vector<2x128xf32>
    %225 = arith.negf %224 : vector<2x128xf32>
    %226 = math.exp %225 : vector<2x128xf32>
    %cst_40 = arith.constant 1.000000e+00 : f32
    %227 = vector.broadcast %cst_40 : f32 to vector<2x128xf32>
    %228 = arith.addf %227, %226 : vector<2x128xf32>
    %229 = arith.divf %227, %228 : vector<2x128xf32>
    %230 = vector.extract_strided_slice %217 {offsets = [0, 256], sizes = [2, 128], strides = [1, 1]} : vector<2x512xf32> to vector<2x128xf32>
    %231 = math.tanh %230 : vector<2x128xf32>
    %232 = vector.extract_strided_slice %217 {offsets = [0, 384], sizes = [2, 128], strides = [1, 1]} : vector<2x512xf32> to vector<2x128xf32>
    %233 = arith.negf %232 : vector<2x128xf32>
    %234 = math.exp %233 : vector<2x128xf32>
    %cst_41 = arith.constant 1.000000e+00 : f32
    %235 = vector.broadcast %cst_41 : f32 to vector<2x128xf32>
    %236 = arith.addf %235, %234 : vector<2x128xf32>
    %237 = arith.divf %235, %236 : vector<2x128xf32>
    %238 = arith.mulf %229, %211 : vector<2x128xf32>
    %239 = arith.mulf %223, %231 : vector<2x128xf32>
    %240 = arith.addf %238, %239 : vector<2x128xf32>
    %241 = math.tanh %240 : vector<2x128xf32>
    %242 = arith.mulf %237, %241 : vector<2x128xf32>
    %243 = arith.truncf %242 : vector<2x128xf32> to vector<2x128xbf16>
    %c0_42 = arith.constant 0 : index
    %c0_43 = arith.constant 0 : index
    %244 = vector.load %arg6[%c0_42, %c0_43] : memref<8x32xbf16, #tpu.memory_space<vmem>>, vector<8x32xbf16>
    %c0_44 = arith.constant 0 : index
    %c0_45 = arith.constant 0 : index
    %245 = vector.load %arg5[%c0_44, %c0_45] : memref<128x32xbf16, #tpu.memory_space<vmem>>, vector<128x32xbf16>
    %cst_46 = arith.constant dense<0.000000e+00> : vector<2x32xf32>
    %246 = tpu.matmul %243, %245, %cst_46 {dimension_numbers = #tpu.dot_dimension_numbers<[1], [0], [0], [1], [0, 0, 1, 1], [], []>} : vector<2x128xbf16>, vector<128x32xbf16>, vector<2x32xf32> -> vector<2x32xf32>
    %c0_47 = arith.constant 0 : index
    %c0_48 = arith.constant 0 : index
    %247 = vector.load %arg7[%c0_47, %c0_48] : memref<1x32xf32, #tpu.memory_space<vmem>>, vector<1x32xf32>
    %248 = vector.broadcast %247 : vector<1x32xf32> to vector<2x32xf32>
    %249 = arith.addf %246, %248 : vector<2x32xf32>
    %cst_49 = arith.constant 0.000000e+00 : f32
    %250 = vector.broadcast %cst_49 : f32 to vector<8x2x128xf32>
    %c0_50 = arith.constant 0 : index
    %c0_51 = arith.constant 0 : index
    %c0_52 = arith.constant 0 : index
    %251 = vector.load %arg8[%c0_50, %c0_51, %c0_52] : memref<8x2x128xf32, #tpu.memory_space<vmem>>, vector<8x2x128xf32>
    tpu.vector_store %arg8[%c0_50, %c0_51, %c0_52], %250 {strides = array<i32>} : memref<8x2x128xf32, #tpu.memory_space<vmem>>, vector<8x2x128xf32>,
    %cst_53 = arith.constant 0.000000e+00 : f32
    %252 = vector.broadcast %cst_53 : f32 to vector<2x8xf32>
    %cst_54 = arith.constant 0.000000e+00 : f32
    %253 = vector.broadcast %cst_54 : f32 to vector<2x8xf32>
    %254 = arith.truncf %252 : vector<2x8xf32> to vector<2x8xbf16>
    %cst_55 = arith.constant dense<0.000000e+00> : vector<2x32xf32>
    %255 = tpu.matmul %254, %244, %cst_55 {dimension_numbers = #tpu.dot_dimension_numbers<[1], [0], [0], [1], [0, 0, 1, 1], [], []>} : vector<2x8xbf16>, vector<8x32xbf16>, vector<2x32xf32> -> vector<2x32xf32>
    %256 = arith.addf %249, %255 : vector<2x32xf32>
    %257 = vector.extract_strided_slice %256 {offsets = [0, 0], sizes = [2, 8], strides = [1, 1]} : vector<2x32xf32> to vector<2x8xf32>
    %258 = arith.negf %257 : vector<2x8xf32>
    %259 = math.exp %258 : vector<2x8xf32>
    %cst_56 = arith.constant 1.000000e+00 : f32
    %260 = vector.broadcast %cst_56 : f32 to vector<2x8xf32>
    %261 = arith.addf %260, %259 : vector<2x8xf32>
    %262 = arith.divf %260, %261 : vector<2x8xf32>
    %263 = vector.extract_strided_slice %256 {offsets = [0, 8], sizes = [2, 8], strides = [1, 1]} : vector<2x32xf32> to vector<2x8xf32>
    %264 = arith.negf %263 : vector<2x8xf32>
    %265 = math.exp %264 : vector<2x8xf32>
    %cst_57 = arith.constant 1.000000e+00 : f32
    %266 = vector.broadcast %cst_57 : f32 to vector<2x8xf32>
    %267 = arith.addf %266, %265 : vector<2x8xf32>
    %268 = arith.divf %266, %267 : vector<2x8xf32>
    %269 = vector.extract_strided_slice %256 {offsets = [0, 16], sizes = [2, 8], strides = [1, 1]} : vector<2x32xf32> to vector<2x8xf32>
    %270 = math.tanh %269 : vector<2x8xf32>
    %271 = vector.extract_strided_slice %256 {offsets = [0, 24], sizes = [2, 8], strides = [1, 1]} : vector<2x32xf32> to vector<2x8xf32>
    %272 = arith.negf %271 : vector<2x8xf32>
    %273 = math.exp %272 : vector<2x8xf32>
    %cst_58 = arith.constant 1.000000e+00 : f32
    %274 = vector.broadcast %cst_58 : f32 to vector<2x8xf32>
    %275 = arith.addf %274, %273 : vector<2x8xf32>
    %276 = arith.divf %274, %275 : vector<2x8xf32>
    %277 = arith.mulf %268, %253 : vector<2x8xf32>
    %278 = arith.mulf %262, %270 : vector<2x8xf32>
    %279 = arith.addf %277, %278 : vector<2x8xf32>
    %280 = math.tanh %279 : vector<2x8xf32>
    %281 = arith.mulf %276, %280 : vector<2x8xf32>
    %c0_59 = arith.constant 0 : index
    %c0_60 = arith.constant 0 : index
    %c0_61 = arith.constant 0 : index
    %282 = vector.load %arg8[%c0_59, %c0_60, %c0_61] : memref<8x2x128xf32, #tpu.memory_space<vmem>>, vector<1x2x8xf32>
    %283 = vector.shape_cast %282 : vector<1x2x8xf32> to vector<2x8xf32>
    %284 = vector.shape_cast %281 : vector<2x8xf32> to vector<1x2x8xf32>
    tpu.vector_store %arg8[%c0_59, %c0_60, %c0_61], %284 {strides = array<i32>} : memref<8x2x128xf32, #tpu.memory_space<vmem>>, vector<1x2x8xf32>,
    %285 = arith.truncf %281 : vector<2x8xf32> to vector<2x8xbf16>
    %cst_62 = arith.constant dense<0.000000e+00> : vector<2x32xf32>
    %286 = tpu.matmul %285, %244, %cst_62 {dimension_numbers = #tpu.dot_dimension_numbers<[1], [0], [0], [1], [0, 0, 1, 1], [], []>} : vector<2x8xbf16>, vector<8x32xbf16>, vector<2x32xf32> -> vector<2x32xf32>
    %287 = arith.addf %249, %286 : vector<2x32xf32>
    %288 = vector.extract_strided_slice %287 {offsets = [0, 0], sizes = [2, 8], strides = [1, 1]} : vector<2x32xf32> to vector<2x8xf32>
    %289 = arith.negf %288 : vector<2x8xf32>
    %290 = math.exp %289 : vector<2x8xf32>
    %cst_63 = arith.constant 1.000000e+00 : f32
    %291 = vector.broadcast %cst_63 : f32 to vector<2x8xf32>
    %292 = arith.addf %291, %290 : vector<2x8xf32>
    %293 = arith.divf %291, %292 : vector<2x8xf32>
    %294 = vector.extract_strided_slice %287 {offsets = [0, 8], sizes = [2, 8], strides = [1, 1]} : vector<2x32xf32> to vector<2x8xf32>
    %295 = arith.negf %294 : vector<2x8xf32>
    %296 = math.exp %295 : vector<2x8xf32>
    %cst_64 = arith.constant 1.000000e+00 : f32
    %297 = vector.broadcast %cst_64 : f32 to vector<2x8xf32>
    %298 = arith.addf %297, %296 : vector<2x8xf32>
    %299 = arith.divf %297, %298 : vector<2x8xf32>
    %300 = vector.extract_strided_slice %287 {offsets = [0, 16], sizes = [2, 8], strides = [1, 1]} : vector<2x32xf32> to vector<2x8xf32>
    %301 = math.tanh %300 : vector<2x8xf32>
    %302 = vector.extract_strided_slice %287 {offsets = [0, 24], sizes = [2, 8], strides = [1, 1]} : vector<2x32xf32> to vector<2x8xf32>
    %303 = arith.negf %302 : vector<2x8xf32>
    %304 = math.exp %303 : vector<2x8xf32>
    %cst_65 = arith.constant 1.000000e+00 : f32
    %305 = vector.broadcast %cst_65 : f32 to vector<2x8xf32>
    %306 = arith.addf %305, %304 : vector<2x8xf32>
    %307 = arith.divf %305, %306 : vector<2x8xf32>
    %308 = arith.mulf %299, %279 : vector<2x8xf32>
    %309 = arith.mulf %293, %301 : vector<2x8xf32>
    %310 = arith.addf %308, %309 : vector<2x8xf32>
    %311 = math.tanh %310 : vector<2x8xf32>
    %312 = arith.mulf %307, %311 : vector<2x8xf32>
    %c1 = arith.constant 1 : index
    %c0_66 = arith.constant 0 : index
    %c0_67 = arith.constant 0 : index
    %313 = vector.load %arg8[%c1, %c0_66, %c0_67] : memref<8x2x128xf32, #tpu.memory_space<vmem>>, vector<1x2x8xf32>
    %314 = vector.shape_cast %313 : vector<1x2x8xf32> to vector<2x8xf32>
    %315 = vector.shape_cast %312 : vector<2x8xf32> to vector<1x2x8xf32>
    tpu.vector_store %arg8[%c1, %c0_66, %c0_67], %315 {strides = array<i32>} : memref<8x2x128xf32, #tpu.memory_space<vmem>>, vector<1x2x8xf32>,
    %316 = arith.truncf %312 : vector<2x8xf32> to vector<2x8xbf16>
    %cst_68 = arith.constant dense<0.000000e+00> : vector<2x32xf32>
    %317 = tpu.matmul %316, %244, %cst_68 {dimension_numbers = #tpu.dot_dimension_numbers<[1], [0], [0], [1], [0, 0, 1, 1], [], []>} : vector<2x8xbf16>, vector<8x32xbf16>, vector<2x32xf32> -> vector<2x32xf32>
    %318 = arith.addf %249, %317 : vector<2x32xf32>
    %319 = vector.extract_strided_slice %318 {offsets = [0, 0], sizes = [2, 8], strides = [1, 1]} : vector<2x32xf32> to vector<2x8xf32>
    %320 = arith.negf %319 : vector<2x8xf32>
    %321 = math.exp %320 : vector<2x8xf32>
    %cst_69 = arith.constant 1.000000e+00 : f32
    %322 = vector.broadcast %cst_69 : f32 to vector<2x8xf32>
    %323 = arith.addf %322, %321 : vector<2x8xf32>
    %324 = arith.divf %322, %323 : vector<2x8xf32>
    %325 = vector.extract_strided_slice %318 {offsets = [0, 8], sizes = [2, 8], strides = [1, 1]} : vector<2x32xf32> to vector<2x8xf32>
    %326 = arith.negf %325 : vector<2x8xf32>
    %327 = math.exp %326 : vector<2x8xf32>
    %cst_70 = arith.constant 1.000000e+00 : f32
    %328 = vector.broadcast %cst_70 : f32 to vector<2x8xf32>
    %329 = arith.addf %328, %327 : vector<2x8xf32>
    %330 = arith.divf %328, %329 : vector<2x8xf32>
    %331 = vector.extract_strided_slice %318 {offsets = [0, 16], sizes = [2, 8], strides = [1, 1]} : vector<2x32xf32> to vector<2x8xf32>
    %332 = math.tanh %331 : vector<2x8xf32>
    %333 = vector.extract_strided_slice %318 {offsets = [0, 24], sizes = [2, 8], strides = [1, 1]} : vector<2x32xf32> to vector<2x8xf32>
    %334 = arith.negf %333 : vector<2x8xf32>
    %335 = math.exp %334 : vector<2x8xf32>
    %cst_71 = arith.constant 1.000000e+00 : f32
    %336 = vector.broadcast %cst_71 : f32 to vector<2x8xf32>
    %337 = arith.addf %336, %335 : vector<2x8xf32>
    %338 = arith.divf %336, %337 : vector<2x8xf32>
    %339 = arith.mulf %330, %310 : vector<2x8xf32>
    %340 = arith.mulf %324, %332 : vector<2x8xf32>
    %341 = arith.addf %339, %340 : vector<2x8xf32>
    %342 = math.tanh %341 : vector<2x8xf32>
    %343 = arith.mulf %338, %342 : vector<2x8xf32>
    %c2 = arith.constant 2 : index
    %c0_72 = arith.constant 0 : index
    %c0_73 = arith.constant 0 : index
    %344 = vector.load %arg8[%c2, %c0_72, %c0_73] : memref<8x2x128xf32, #tpu.memory_space<vmem>>, vector<1x2x8xf32>
    %345 = vector.shape_cast %344 : vector<1x2x8xf32> to vector<2x8xf32>
    %346 = vector.shape_cast %343 : vector<2x8xf32> to vector<1x2x8xf32>
    tpu.vector_store %arg8[%c2, %c0_72, %c0_73], %346 {strides = array<i32>} : memref<8x2x128xf32, #tpu.memory_space<vmem>>, vector<1x2x8xf32>,
    %347 = arith.truncf %343 : vector<2x8xf32> to vector<2x8xbf16>
    %cst_74 = arith.constant dense<0.000000e+00> : vector<2x32xf32>
    %348 = tpu.matmul %347, %244, %cst_74 {dimension_numbers = #tpu.dot_dimension_numbers<[1], [0], [0], [1], [0, 0, 1, 1], [], []>} : vector<2x8xbf16>, vector<8x32xbf16>, vector<2x32xf32> -> vector<2x32xf32>
    %349 = arith.addf %249, %348 : vector<2x32xf32>
    %350 = vector.extract_strided_slice %349 {offsets = [0, 0], sizes = [2, 8], strides = [1, 1]} : vector<2x32xf32> to vector<2x8xf32>
    %351 = arith.negf %350 : vector<2x8xf32>
    %352 = math.exp %351 : vector<2x8xf32>
    %cst_75 = arith.constant 1.000000e+00 : f32
    %353 = vector.broadcast %cst_75 : f32 to vector<2x8xf32>
    %354 = arith.addf %353, %352 : vector<2x8xf32>
    %355 = arith.divf %353, %354 : vector<2x8xf32>
    %356 = vector.extract_strided_slice %349 {offsets = [0, 8], sizes = [2, 8], strides = [1, 1]} : vector<2x32xf32> to vector<2x8xf32>
    %357 = arith.negf %356 : vector<2x8xf32>
    %358 = math.exp %357 : vector<2x8xf32>
    %cst_76 = arith.constant 1.000000e+00 : f32
    %359 = vector.broadcast %cst_76 : f32 to vector<2x8xf32>
    %360 = arith.addf %359, %358 : vector<2x8xf32>
    %361 = arith.divf %359, %360 : vector<2x8xf32>
    %362 = vector.extract_strided_slice %349 {offsets = [0, 16], sizes = [2, 8], strides = [1, 1]} : vector<2x32xf32> to vector<2x8xf32>
    %363 = math.tanh %362 : vector<2x8xf32>
    %364 = vector.extract_strided_slice %349 {offsets = [0, 24], sizes = [2, 8], strides = [1, 1]} : vector<2x32xf32> to vector<2x8xf32>
    %365 = arith.negf %364 : vector<2x8xf32>
    %366 = math.exp %365 : vector<2x8xf32>
    %cst_77 = arith.constant 1.000000e+00 : f32
    %367 = vector.broadcast %cst_77 : f32 to vector<2x8xf32>
    %368 = arith.addf %367, %366 : vector<2x8xf32>
    %369 = arith.divf %367, %368 : vector<2x8xf32>
    %370 = arith.mulf %361, %341 : vector<2x8xf32>
    %371 = arith.mulf %355, %363 : vector<2x8xf32>
    %372 = arith.addf %370, %371 : vector<2x8xf32>
    %373 = math.tanh %372 : vector<2x8xf32>
    %374 = arith.mulf %369, %373 : vector<2x8xf32>
    %c3 = arith.constant 3 : index
    %c0_78 = arith.constant 0 : index
    %c0_79 = arith.constant 0 : index
    %375 = vector.load %arg8[%c3, %c0_78, %c0_79] : memref<8x2x128xf32, #tpu.memory_space<vmem>>, vector<1x2x8xf32>
    %376 = vector.shape_cast %375 : vector<1x2x8xf32> to vector<2x8xf32>
    %377 = vector.shape_cast %374 : vector<2x8xf32> to vector<1x2x8xf32>
    tpu.vector_store %arg8[%c3, %c0_78, %c0_79], %377 {strides = array<i32>} : memref<8x2x128xf32, #tpu.memory_space<vmem>>, vector<1x2x8xf32>,
    %378 = arith.truncf %374 : vector<2x8xf32> to vector<2x8xbf16>
    %cst_80 = arith.constant dense<0.000000e+00> : vector<2x32xf32>
    %379 = tpu.matmul %378, %244, %cst_80 {dimension_numbers = #tpu.dot_dimension_numbers<[1], [0], [0], [1], [0, 0, 1, 1], [], []>} : vector<2x8xbf16>, vector<8x32xbf16>, vector<2x32xf32> -> vector<2x32xf32>
    %380 = arith.addf %249, %379 : vector<2x32xf32>
    %381 = vector.extract_strided_slice %380 {offsets = [0, 0], sizes = [2, 8], strides = [1, 1]} : vector<2x32xf32> to vector<2x8xf32>
    %382 = arith.negf %381 : vector<2x8xf32>
    %383 = math.exp %382 : vector<2x8xf32>
    %cst_81 = arith.constant 1.000000e+00 : f32
    %384 = vector.broadcast %cst_81 : f32 to vector<2x8xf32>
    %385 = arith.addf %384, %383 : vector<2x8xf32>
    %386 = arith.divf %384, %385 : vector<2x8xf32>
    %387 = vector.extract_strided_slice %380 {offsets = [0, 8], sizes = [2, 8], strides = [1, 1]} : vector<2x32xf32> to vector<2x8xf32>
    %388 = arith.negf %387 : vector<2x8xf32>
    %389 = math.exp %388 : vector<2x8xf32>
    %cst_82 = arith.constant 1.000000e+00 : f32
    %390 = vector.broadcast %cst_82 : f32 to vector<2x8xf32>
    %391 = arith.addf %390, %389 : vector<2x8xf32>
    %392 = arith.divf %390, %391 : vector<2x8xf32>
    %393 = vector.extract_strided_slice %380 {offsets = [0, 16], sizes = [2, 8], strides = [1, 1]} : vector<2x32xf32> to vector<2x8xf32>
    %394 = math.tanh %393 : vector<2x8xf32>
    %395 = vector.extract_strided_slice %380 {offsets = [0, 24], sizes = [2, 8], strides = [1, 1]} : vector<2x32xf32> to vector<2x8xf32>
    %396 = arith.negf %395 : vector<2x8xf32>
    %397 = math.exp %396 : vector<2x8xf32>
    %cst_83 = arith.constant 1.000000e+00 : f32
    %398 = vector.broadcast %cst_83 : f32 to vector<2x8xf32>
    %399 = arith.addf %398, %397 : vector<2x8xf32>
    %400 = arith.divf %398, %399 : vector<2x8xf32>
    %401 = arith.mulf %392, %372 : vector<2x8xf32>
    %402 = arith.mulf %386, %394 : vector<2x8xf32>
    %403 = arith.addf %401, %402 : vector<2x8xf32>
    %404 = math.tanh %403 : vector<2x8xf32>
    %405 = arith.mulf %400, %404 : vector<2x8xf32>
    %c4 = arith.constant 4 : index
    %c0_84 = arith.constant 0 : index
    %c0_85 = arith.constant 0 : index
    %406 = vector.load %arg8[%c4, %c0_84, %c0_85] : memref<8x2x128xf32, #tpu.memory_space<vmem>>, vector<1x2x8xf32>
    %407 = vector.shape_cast %406 : vector<1x2x8xf32> to vector<2x8xf32>
    %408 = vector.shape_cast %405 : vector<2x8xf32> to vector<1x2x8xf32>
    tpu.vector_store %arg8[%c4, %c0_84, %c0_85], %408 {strides = array<i32>} : memref<8x2x128xf32, #tpu.memory_space<vmem>>, vector<1x2x8xf32>,
    %409 = arith.truncf %405 : vector<2x8xf32> to vector<2x8xbf16>
    %cst_86 = arith.constant dense<0.000000e+00> : vector<2x32xf32>
    %410 = tpu.matmul %409, %244, %cst_86 {dimension_numbers = #tpu.dot_dimension_numbers<[1], [0], [0], [1], [0, 0, 1, 1], [], []>} : vector<2x8xbf16>, vector<8x32xbf16>, vector<2x32xf32> -> vector<2x32xf32>
    %411 = arith.addf %249, %410 : vector<2x32xf32>
    %412 = vector.extract_strided_slice %411 {offsets = [0, 0], sizes = [2, 8], strides = [1, 1]} : vector<2x32xf32> to vector<2x8xf32>
    %413 = arith.negf %412 : vector<2x8xf32>
    %414 = math.exp %413 : vector<2x8xf32>
    %cst_87 = arith.constant 1.000000e+00 : f32
    %415 = vector.broadcast %cst_87 : f32 to vector<2x8xf32>
    %416 = arith.addf %415, %414 : vector<2x8xf32>
    %417 = arith.divf %415, %416 : vector<2x8xf32>
    %418 = vector.extract_strided_slice %411 {offsets = [0, 8], sizes = [2, 8], strides = [1, 1]} : vector<2x32xf32> to vector<2x8xf32>
    %419 = arith.negf %418 : vector<2x8xf32>
    %420 = math.exp %419 : vector<2x8xf32>
    %cst_88 = arith.constant 1.000000e+00 : f32
    %421 = vector.broadcast %cst_88 : f32 to vector<2x8xf32>
    %422 = arith.addf %421, %420 : vector<2x8xf32>
    %423 = arith.divf %421, %422 : vector<2x8xf32>
    %424 = vector.extract_strided_slice %411 {offsets = [0, 16], sizes = [2, 8], strides = [1, 1]} : vector<2x32xf32> to vector<2x8xf32>
    %425 = math.tanh %424 : vector<2x8xf32>
    %426 = vector.extract_strided_slice %411 {offsets = [0, 24], sizes = [2, 8], strides = [1, 1]} : vector<2x32xf32> to vector<2x8xf32>
    %427 = arith.negf %426 : vector<2x8xf32>
    %428 = math.exp %427 : vector<2x8xf32>
    %cst_89 = arith.constant 1.000000e+00 : f32
    %429 = vector.broadcast %cst_89 : f32 to vector<2x8xf32>
    %430 = arith.addf %429, %428 : vector<2x8xf32>
    %431 = arith.divf %429, %430 : vector<2x8xf32>
    %432 = arith.mulf %423, %403 : vector<2x8xf32>
    %433 = arith.mulf %417, %425 : vector<2x8xf32>
    %434 = arith.addf %432, %433 : vector<2x8xf32>
    %435 = math.tanh %434 : vector<2x8xf32>
    %436 = arith.mulf %431, %435 : vector<2x8xf32>
    %c5 = arith.constant 5 : index
    %c0_90 = arith.constant 0 : index
    %c0_91 = arith.constant 0 : index
    %437 = vector.load %arg8[%c5, %c0_90, %c0_91] : memref<8x2x128xf32, #tpu.memory_space<vmem>>, vector<1x2x8xf32>
    %438 = vector.shape_cast %437 : vector<1x2x8xf32> to vector<2x8xf32>
    %439 = vector.shape_cast %436 : vector<2x8xf32> to vector<1x2x8xf32>
    tpu.vector_store %arg8[%c5, %c0_90, %c0_91], %439 {strides = array<i32>} : memref<8x2x128xf32, #tpu.memory_space<vmem>>, vector<1x2x8xf32>,
    %440 = arith.truncf %436 : vector<2x8xf32> to vector<2x8xbf16>
    %cst_92 = arith.constant dense<0.000000e+00> : vector<2x32xf32>
    %441 = tpu.matmul %440, %244, %cst_92 {dimension_numbers = #tpu.dot_dimension_numbers<[1], [0], [0], [1], [0, 0, 1, 1], [], []>} : vector<2x8xbf16>, vector<8x32xbf16>, vector<2x32xf32> -> vector<2x32xf32>
    %442 = arith.addf %249, %441 : vector<2x32xf32>
    %443 = vector.extract_strided_slice %442 {offsets = [0, 0], sizes = [2, 8], strides = [1, 1]} : vector<2x32xf32> to vector<2x8xf32>
    %444 = arith.negf %443 : vector<2x8xf32>
    %445 = math.exp %444 : vector<2x8xf32>
    %cst_93 = arith.constant 1.000000e+00 : f32
    %446 = vector.broadcast %cst_93 : f32 to vector<2x8xf32>
    %447 = arith.addf %446, %445 : vector<2x8xf32>
    %448 = arith.divf %446, %447 : vector<2x8xf32>
    %449 = vector.extract_strided_slice %442 {offsets = [0, 8], sizes = [2, 8], strides = [1, 1]} : vector<2x32xf32> to vector<2x8xf32>
    %450 = arith.negf %449 : vector<2x8xf32>
    %451 = math.exp %450 : vector<2x8xf32>
    %cst_94 = arith.constant 1.000000e+00 : f32
    %452 = vector.broadcast %cst_94 : f32 to vector<2x8xf32>
    %453 = arith.addf %452, %451 : vector<2x8xf32>
    %454 = arith.divf %452, %453 : vector<2x8xf32>
    %455 = vector.extract_strided_slice %442 {offsets = [0, 16], sizes = [2, 8], strides = [1, 1]} : vector<2x32xf32> to vector<2x8xf32>
    %456 = math.tanh %455 : vector<2x8xf32>
    %457 = vector.extract_strided_slice %442 {offsets = [0, 24], sizes = [2, 8], strides = [1, 1]} : vector<2x32xf32> to vector<2x8xf32>
    %458 = arith.negf %457 : vector<2x8xf32>
    %459 = math.exp %458 : vector<2x8xf32>
    %cst_95 = arith.constant 1.000000e+00 : f32
    %460 = vector.broadcast %cst_95 : f32 to vector<2x8xf32>
    %461 = arith.addf %460, %459 : vector<2x8xf32>
    %462 = arith.divf %460, %461 : vector<2x8xf32>
    %463 = arith.mulf %454, %434 : vector<2x8xf32>
    %464 = arith.mulf %448, %456 : vector<2x8xf32>
    %465 = arith.addf %463, %464 : vector<2x8xf32>
    %466 = math.tanh %465 : vector<2x8xf32>
    %467 = arith.mulf %462, %466 : vector<2x8xf32>
    %c6 = arith.constant 6 : index
    %c0_96 = arith.constant 0 : index
    %c0_97 = arith.constant 0 : index
    %468 = vector.load %arg8[%c6, %c0_96, %c0_97] : memref<8x2x128xf32, #tpu.memory_space<vmem>>, vector<1x2x8xf32>
    %469 = vector.shape_cast %468 : vector<1x2x8xf32> to vector<2x8xf32>
    %470 = vector.shape_cast %467 : vector<2x8xf32> to vector<1x2x8xf32>
    tpu.vector_store %arg8[%c6, %c0_96, %c0_97], %470 {strides = array<i32>} : memref<8x2x128xf32, #tpu.memory_space<vmem>>, vector<1x2x8xf32>,
    %471 = arith.truncf %467 : vector<2x8xf32> to vector<2x8xbf16>
    %cst_98 = arith.constant dense<0.000000e+00> : vector<2x32xf32>
    %472 = tpu.matmul %471, %244, %cst_98 {dimension_numbers = #tpu.dot_dimension_numbers<[1], [0], [0], [1], [0, 0, 1, 1], [], []>} : vector<2x8xbf16>, vector<8x32xbf16>, vector<2x32xf32> -> vector<2x32xf32>
    %473 = arith.addf %249, %472 : vector<2x32xf32>
    %474 = vector.extract_strided_slice %473 {offsets = [0, 0], sizes = [2, 8], strides = [1, 1]} : vector<2x32xf32> to vector<2x8xf32>
    %475 = arith.negf %474 : vector<2x8xf32>
    %476 = math.exp %475 : vector<2x8xf32>
    %cst_99 = arith.constant 1.000000e+00 : f32
    %477 = vector.broadcast %cst_99 : f32 to vector<2x8xf32>
    %478 = arith.addf %477, %476 : vector<2x8xf32>
    %479 = arith.divf %477, %478 : vector<2x8xf32>
    %480 = vector.extract_strided_slice %473 {offsets = [0, 8], sizes = [2, 8], strides = [1, 1]} : vector<2x32xf32> to vector<2x8xf32>
    %481 = arith.negf %480 : vector<2x8xf32>
    %482 = math.exp %481 : vector<2x8xf32>
    %cst_100 = arith.constant 1.000000e+00 : f32
    %483 = vector.broadcast %cst_100 : f32 to vector<2x8xf32>
    %484 = arith.addf %483, %482 : vector<2x8xf32>
    %485 = arith.divf %483, %484 : vector<2x8xf32>
    %486 = vector.extract_strided_slice %473 {offsets = [0, 16], sizes = [2, 8], strides = [1, 1]} : vector<2x32xf32> to vector<2x8xf32>
    %487 = math.tanh %486 : vector<2x8xf32>
    %488 = vector.extract_strided_slice %473 {offsets = [0, 24], sizes = [2, 8], strides = [1, 1]} : vector<2x32xf32> to vector<2x8xf32>
    %489 = arith.negf %488 : vector<2x8xf32>
    %490 = math.exp %489 : vector<2x8xf32>
    %cst_101 = arith.constant 1.000000e+00 : f32
    %491 = vector.broadcast %cst_101 : f32 to vector<2x8xf32>
    %492 = arith.addf %491, %490 : vector<2x8xf32>
    %493 = arith.divf %491, %492 : vector<2x8xf32>
    %494 = arith.mulf %485, %465 : vector<2x8xf32>
    %495 = arith.mulf %479, %487 : vector<2x8xf32>
    %496 = arith.addf %494, %495 : vector<2x8xf32>
    %497 = math.tanh %496 : vector<2x8xf32>
    %498 = arith.mulf %493, %497 : vector<2x8xf32>
    %c7 = arith.constant 7 : index
    %c0_102 = arith.constant 0 : index
    %c0_103 = arith.constant 0 : index
    %499 = vector.load %arg8[%c7, %c0_102, %c0_103] : memref<8x2x128xf32, #tpu.memory_space<vmem>>, vector<1x2x8xf32>
    %500 = vector.shape_cast %499 : vector<1x2x8xf32> to vector<2x8xf32>
    %501 = vector.shape_cast %498 : vector<2x8xf32> to vector<1x2x8xf32>
    tpu.vector_store %arg8[%c7, %c0_102, %c0_103], %501 {strides = array<i32>} : memref<8x2x128xf32, #tpu.memory_space<vmem>>, vector<1x2x8xf32>,
    return
  }
  func.func @transform_0(%arg0: i32) -> (i32, i32, i32) {
    %c0_i32 = arith.constant 0 : i32
    %c0_i32_0 = arith.constant 0 : i32
    %c0_i32_1 = arith.constant 0 : i32
    return %c0_i32, %arg0, %c0_i32_0 : i32, i32, i32
  }
  func.func @transform_1(%arg0: i32) -> (i32, i32) {
    %c0_i32 = arith.constant 0 : i32
    %c0_i32_0 = arith.constant 0 : i32
    %c0_i32_1 = arith.constant 0 : i32
    return %c0_i32, %c0_i32_0 : i32, i32
  }
  func.func @transform_2(%arg0: i32) -> (i32, i32) {
    %c0_i32 = arith.constant 0 : i32
    %c0_i32_0 = arith.constant 0 : i32
    %c0_i32_1 = arith.constant 0 : i32
    return %c0_i32, %c0_i32_0 : i32, i32
  }
  func.func @transform_3(%arg0: i32) -> (i32, i32) {
    %c0_i32 = arith.constant 0 : i32
    %c0_i32_0 = arith.constant 0 : i32
    %c0_i32_1 = arith.constant 0 : i32
    return %c0_i32, %c0_i32_0 : i32, i32
  }
  func.func @transform_4(%arg0: i32) -> (i32, i32) {
    %c0_i32 = arith.constant 0 : i32
    %c0_i32_0 = arith.constant 0 : i32
    %c0_i32_1 = arith.constant 0 : i32
    return %c0_i32, %c0_i32_0 : i32, i32
  }
  func.func @transform_5(%arg0: i32) -> (i32, i32) {
    %c0_i32 = arith.constant 0 : i32
    %c0_i32_0 = arith.constant 0 : i32
    %c0_i32_1 = arith.constant 0 : i32
    return %c0_i32, %c0_i32_0 : i32, i32
  }
  func.func @transform_6(%arg0: i32) -> (i32, i32) {
    %c0_i32 = arith.constant 0 : i32
    %c0_i32_0 = arith.constant 0 : i32
    %c0_i32_1 = arith.constant 0 : i32
    return %c0_i32, %c0_i32_0 : i32, i32
  }
  func.func @transform_7(%arg0: i32) -> (i32, i32, i32) {
    %c0_i32 = arith.constant 0 : i32
    %c0_i32_0 = arith.constant 0 : i32
    %c0_i32_1 = arith.constant 0 : i32
    return %c0_i32, %arg0, %c0_i32_0 : i32, i32, i32
  }
}

</mosaic_0001>

<bundles_post_ra>
// kernel: tpu_custom_call.1
= control target key start
LH: loop header
LB: loop body
LE: loop exit
PB: predicated region body
PF: predicated region fallthrough
CT: control target
= control target key end

     0   :  { %12 = vsyncpa [#allocation3], 0  ;;  %s3422_s0 = inlined_call_operand.vmem [shape: f32[8,2,8], index: 0, kind: input, shape index: {}]   ;;  %s3423_s1 = inlined_call_operand.vmem [shape: bf16[8,512], index: 1, kind: input, shape index: {}]   ;;  %s3424_s2 = inlined_call_operand.hbm [shape: bf16[128,512], index: 2, kind: input, shape index: {}]   ;;  %s3425_s3 = inlined_call_operand.vmem [shape: f32[1,512], index: 3, kind: input, shape index: {}]   ;;  %s3426_s4 = inlined_call_operand.vmem [shape: bf16[128,32], index: 4, kind: input, shape index: {}]   ;;  %s3427_s5 = inlined_call_operand.vmem [shape: bf16[8,32], index: 5, kind: input, shape index: {}]   ;;  %s3428_s6 = inlined_call_operand.vmem [shape: f32[1,32], index: 6, kind: input, shape index: {}]   ;;  %s3429_s7 = inlined_call_operand.hbm [shape: f32[8,2,128], index: 7, kind: output, shape index: {}]  }
   0x1   :  { %13 = vsyncpa [#allocation4], 0  ;;  %s2709_s24 = smov [#allocation2]   ;;  %s2661_s28 = scalar_lea.hbm %s3424_s2, 4096 }
   0x2   :  { %s23_s25 = sshll.u32 %s2709_s24, 4  ;;  %p2662_p0 = scmp.ne.s32.totalorder %s3424_s2, %s2661_s28  ;;  %s24_s25 = int_to_ptr.vmem [resolvable:$true] %s23_s25 }
   0x3   :  { %p2665_p1 = scmp.lt.u32.totalorder %s2661_s28, %s3424_s2 }
   0x5   :  { %p2667_p2 = pnand %p2665_p1, %p2662_p0 }
   0x7   :  { %2670 = shalt.err (!%p2667_p2)
}
   0x8   :  { %s2671_s10 = scalar_lea.vmem %s24_s25, 4096  ;;  %p2676_p4 = scmp.lt.s32.totalorder %s24_s25, %s24_s25 }
   0x9   :  { %p2672_p3 = scmp.ne.s32.totalorder %s24_s25, %s2671_s10  ;;  %p2677_p5 = scmp.lt.s32.totalorder %s2671_s10, %s2671_s10 }
   0xb   :  { %p2678_p6 = por %p2677_p5, %p2676_p4 }
   0xd   :  { %p2679_p7 = pnand %p2678_p6, %p2672_p3 }
   0xf   :  { %2682 = shalt.err (!%p2679_p7)
}
  0x10   :  { %s2710_s11 = smov 256   ;;  %s2711_s12 = smov 16  }
  0x11   :  { %29 = dma.hbm_to_vmem [thread:$0]  %s3424_s2, 4096, %s24_s25, [#allocation3], %s2710_s11, %s2710_s11, %s2711_s12  }
  0x12   :  { %2705 = dma.done.wait [#allocation3], 4096  }
  0x13   :  { %2706 = vsyncadd [#allocation3], 4294963200  ;;  %v2712_v0 = vmov 0   ;;  %v2713_v1 = vmov 1983009808   ;;  %v63_v3 = vlaneseq  ;;  %v95_v6 = vld [vmem:[%s3423_s1] sm:$0xff] }
  0x14   :  { %210 = vmatprep.mubr.bf16.mxu0 %v2712_v0  ;;  %253 = vmatprep.mubr.bf16.mxu1 %v2712_v0  ;;  %v61_v2 = vunpack.c.l.s4 %v2713_v1  ;;  %vm165_vm0 = vcmask 1043456   ;;  %v96_v7 = vld [vmem:[%s3423_s1 + $0x8] sm:$0xff]  ;;  %v2184_v8 = vcombine.high %v95_v6, %v95_v6  ;;  %v2183_v10 = vcombine.low %v95_v6, %v95_v6  ;;  %v2785_v11 = vld [vmem:[#allocation2 + $0x4] ss:$16 sps:$4 sm:$0xff]   ;;  %v42_v16 = vld [vmem:[%s3422_s0] sm:$0x3] }
  0x15   :  { %v2777_v5 = vshrl.u32 %v63_v3, 7  ;;  %v2186_v9 = vcombine.high %v96_v7, %v96_v7  ;;  %v2185_v12 = vcombine.low %v96_v7, %v96_v7  ;;  %v2787_v13 = vld [vmem:[#allocation2 + $0xc] ss:$16 sps:$4 sm:$0xff]   ;;  %v43_v17 = vld [vmem:[%s3422_s0 + $0x2] sm:$0x3]  ;;  %vm161_vm1 = vcmask 64512  }
  0x16   :  { %v62_v4 = vunpack.c.0.s8 %v61_v2  ;;  %2187 = vmatprep.subr.msk.bf16.mxu0 %vm165_vm0, %v2184_v8  ;;  %v167_v15 = vsel %vm165_vm0, %v2183_v10, 0  ;;  %v44_v19 = vld [vmem:[%s3422_s0 + $0x4] sm:$0x3]  ;;  %v45_v20 = vld [vmem:[%s3422_s0 + $0x6] sm:$0x3]  ;;  %v58_v21 = vcombine.low %v42_v16, %v43_v17  ;;  %vm2715_vm2 = vmmov 0  }
  0x17   :  { %2189 = vmatprep.subr.msk.bf16.mxu1 %vm165_vm0, %v2186_v9  ;;  %179 = vmatpush1.bf16.msra.mxu0 %v167_v15  ;;  %v173_v18 = vsel %vm165_vm0, %v2185_v12, 0  ;;  %v46_v22 = vld [vmem:[%s3422_s0 + $0x8] sm:$0x3]  ;;  %v47_v23 = vld [vmem:[%s3422_s0 + $0xa] sm:$0x3]  ;;  %v59_v25 = vcombine.low %v44_v19, %v45_v20  ;;  %v141_v3 = vsub.s32 2, %v2777_v5 }
  0x18   :  { %v65_v14 = vsub.s32 %v62_v4, %v2777_v5  ;;  %222 = vmatpush1.bf16.msra.mxu1 %v173_v18  ;;  %424 = vmatprep.subr.bf16.mxu0 %v2785_v11  ;;  %v48_v24 = vld [vmem:[%s3422_s0 + $0xc] sm:$0x3]  ;;  %v49_v26 = vld [vmem:[%s3422_s0 + $0xe] sm:$0x3]  ;;  %v75_v28 = vcombine.low %v46_v22, %v47_v23  ;;  %v2820_v35 = vld [vmem:[#allocation2] ss:$16 sps:$4 sm:$0xff]  }
  0x19   :  { %465 = vmatprep.subr.bf16.mxu1 %v2787_v13  ;;  %v76_v30 = vcombine.low %v48_v24, %v49_v26  ;;  %v2822_v36 = vld [vmem:[#allocation2 + $0x8] ss:$16 sps:$4 sm:$0xff]   ;;  %v2824_v38 = vld [vmem:[#allocation2 + $0x24] ss:$16 sps:$4 sm:$0xff]   ;;  %v2826_v39 = vld [vmem:[#allocation2 + $0x2c] ss:$16 sps:$4 sm:$0xff]  }
  0x1a   :  { %v66_v27 = vrot.slane %v58_v21, %v65_v14  ;;  %v73_v29 = vrot.slane %v59_v25, %v65_v14  ;;  %v83_v31 = vrot.slane %v75_v28, %v65_v14  ;;  %v2832_v40 = vld [vmem:[#allocation2 + $0x20] ss:$16 sps:$4 sm:$0xff]   ;;  %v2834_v41 = vld [vmem:[#allocation2 + $0x28] ss:$16 sps:$4 sm:$0xff]   ;;  %v2836_v42 = vld [vmem:[#allocation2 + $0x44] ss:$16 sps:$4 sm:$0xff]  }
  0x1b   :  { %v90_v33 = vrot.slane %v76_v30, %v65_v14  ;;  %v2840_v43 = vld [vmem:[#allocation2 + $0x4c] ss:$16 sps:$4 sm:$0xff]   ;;  %v2844_v44 = vld [vmem:[#allocation2 + $0x40] ss:$16 sps:$4 sm:$0xff]   ;;  %v2848_v45 = vld [vmem:[#allocation2 + $0x48] ss:$16 sps:$4 sm:$0xff]  }
  0x1c   :  { %v74_v32 = vcombine.low %v66_v27, %v73_v29  ;;  %v2852_v46 = vld [vmem:[#allocation2 + $0x64] ss:$16 sps:$4 sm:$0xff]   ;;  %v2854_v47 = vld [vmem:[#allocation2 + $0x6c] ss:$16 sps:$4 sm:$0xff]   ;;  %v2858_v48 = vld [vmem:[#allocation2 + $0x60] ss:$16 sps:$4 sm:$0xff]  }
  0x1d   :  { %v91_v34 = vcombine.low %v83_v31, %v90_v33  ;;  %v2860_v49 = vld [vmem:[#allocation2 + $0x68] ss:$16 sps:$4 sm:$0xff]   ;;  %v2862_v50 = vld [vmem:[#allocation2 + $0x84] ss:$16 sps:$4 sm:$0xff]   ;;  %v2866_v51 = vld [vmem:[#allocation2 + $0x8c] ss:$16 sps:$4 sm:$0xff]  }
  0x1e   :  { %v2868_v52 = vld [vmem:[#allocation2 + $0x80] ss:$16 sps:$4 sm:$0xff]   ;;  %v2870_v53 = vld [vmem:[#allocation2 + $0x88] ss:$16 sps:$4 sm:$0xff]   ;;  %v2872_v54 = vld [vmem:[#allocation2 + $0xa4] ss:$16 sps:$4 sm:$0xff]  }
  0x1f   :  { %v94_v37 = vpack.c.bf16 %v91_v34, %v74_v32  ;;  %v2874_v55 = vld [vmem:[#allocation2 + $0xac] ss:$16 sps:$4 sm:$0xff]   ;;  %v2882_v56 = vld [vmem:[#allocation2 + $0xa0] ss:$16 sps:$4 sm:$0xff]   ;;  %v2884_v57 = vld [vmem:[#allocation2 + $0xa8] ss:$16 sps:$4 sm:$0xff]  }
  0x20   :  { %v2888_v58 = vld [vmem:[#allocation2 + $0xc4] ss:$16 sps:$4 sm:$0xff]   ;;  %v2890_v59 = vld [vmem:[#allocation2 + $0xcc] ss:$16 sps:$4 sm:$0xff]   ;;  %v2894_v60 = vld [vmem:[#allocation2 + $0xc0] ss:$16 sps:$4 sm:$0xff]  }
  0x21   :  { %2188 = vmatmul.mubr.msk.bf16.vlgmr.msra.gmra.mrb[0].mxu0 %vm161_vm1, %v94_v37  ;;  %2190 = vmatmul.mubr.msk.bf16.vlgmr.msra.gmra.mrb[0].mxu1 %vm161_vm1, %v94_v37  ;;  %v2896_v61 = vld [vmem:[#allocation2 + $0xc8] ss:$16 sps:$4 sm:$0xff]   ;;  %v2900_v62 = vld [vmem:[#allocation2 + $0xe4] ss:$16 sps:$4 sm:$0xff]   ;;  %v2902_v63 = vld [vmem:[#allocation2 + $0xec] ss:$16 sps:$4 sm:$0xff]  }
  0x22   :  { %425 = vmatpush1.bf16.msra.mxu0 %v2820_v35  ;;  %466 = vmatpush1.bf16.msra.mxu1 %v2822_v36  ;;  %v2906_v1 = vld [vmem:[#allocation2 + $0xe0] ss:$16 sps:$4 sm:$0xff]   ;;  %v2908_v2 = vld [vmem:[#allocation2 + $0xe8] ss:$16 sps:$4 sm:$0xff]   ;;  %v145_v4 = vsub.s32 3, %v2777_v5  ;;  %v133_v6 = vsub.s32 0, %v2777_v5 }
  0x23   :  { %426 = vmatprep.subr.bf16.mxu0 %v2824_v38  ;;  %467 = vmatprep.subr.bf16.mxu1 %v2826_v39  ;;  %v129_v7 = vld [vmem:[%s3425_s3] sm:$0xf]  ;;  %v137_v8 = vsub.s32 1, %v2777_v5  ;;  %s2716_s27 = smov 112   ;;  %s2718_s28 = smov 104   ;;  %vm1618_vm3 = vcmask 58368  }
  0x24   :  { %456 = vmatprep.mubr.bf16.mxu0 %v2712_v0  ;;  %497 = vmatprep.mubr.bf16.mxu1 %v2712_v0  ;;  %v142_v9 = vrot.slane %v129_v7, %v141_v3  ;;  %v146_v14 = vrot.slane %v129_v7, %v145_v4  ;;  %v134_v15 = vrot.slane %v129_v7, %v133_v6 }
  0x25   :  { %v138_v18 = vrot.slane %v129_v7, %v137_v8 }
  0x26   :  { %427 = vmatpush1.bf16.msra.mxu0 %v2832_v40  ;;  %468 = vmatpush1.bf16.msra.mxu1 %v2834_v41 }
  0x27   :  { %428 = vmatprep.subr.bf16.mxu0 %v2836_v42  ;;  %469 = vmatprep.subr.bf16.mxu1 %v2840_v43 }
  0x2a   :  { %429 = vmatpush1.bf16.msra.mxu0 %v2844_v44  ;;  %470 = vmatpush1.bf16.msra.mxu1 %v2848_v45 }
  0x2b   :  { %430 = vmatprep.subr.bf16.mxu0 %v2852_v46  ;;  %471 = vmatprep.subr.bf16.mxu1 %v2854_v47 }
  0x2e   :  { %431 = vmatpush1.bf16.msra.mxu0 %v2858_v48  ;;  %472 = vmatpush1.bf16.msra.mxu1 %v2860_v49 }
  0x2f   :  { %432 = vmatprep.subr.bf16.mxu0 %v2862_v50  ;;  %473 = vmatprep.subr.bf16.mxu1 %v2866_v51 }
  0x32   :  { %433 = vmatpush1.bf16.msra.mxu0 %v2868_v52  ;;  %474 = vmatpush1.bf16.msra.mxu1 %v2870_v53 }
  0x33   :  { %434 = vmatprep.subr.bf16.mxu0 %v2872_v54  ;;  %475 = vmatprep.subr.bf16.mxu1 %v2874_v55 }
  0x36   :  { %435 = vmatpush1.bf16.msra.mxu0 %v2882_v56  ;;  %476 = vmatpush1.bf16.msra.mxu1 %v2884_v57 }
  0x37   :  { %436 = vmatprep.subr.bf16.mxu0 %v2888_v58  ;;  %477 = vmatprep.subr.bf16.mxu1 %v2890_v59 }
  0x3a   :  { %437 = vmatpush1.bf16.msra.mxu0 %v2894_v60  ;;  %478 = vmatpush1.bf16.msra.mxu1 %v2896_v61 }
  0x3b   :  { %438 = vmatprep.subr.bf16.mxu0 %v2900_v62  ;;  %479 = vmatprep.subr.bf16.mxu1 %v2902_v63 }
  0x3e   :  { %439 = vmatpush1.bf16.msra.mxu0 %v2906_v1  ;;  %480 = vmatpush1.bf16.msra.mxu1 %v2908_v2 }
  0x3f   :  { %535 = vmatprep.subr.bf16.mxu0 %v2785_v11  ;;  %576 = vmatprep.subr.bf16.mxu1 %v2787_v13 }
  0x41   :  { %457 = vmatmul.mubr.bf16.vlgmr.msra.gmra.mrb[4].mxu0 %v2712_v0  ;;  %498 = vmatmul.mubr.bf16.vlgmr.msra.gmra.mrb[4].mxu1 %v2712_v0 }
  0x42   :  { %536 = vmatpush1.bf16.msra.mxu0 %v2820_v35  ;;  %577 = vmatpush1.bf16.msra.mxu1 %v2822_v36 }
  0x43   :  { %537 = vmatprep.subr.bf16.mxu0 %v2824_v38  ;;  %578 = vmatprep.subr.bf16.mxu1 %v2826_v39 }
  0x44   :  { %567 = vmatprep.mubr.bf16.mxu0 %v2712_v0  ;;  %608 = vmatprep.mubr.bf16.mxu1 %v2712_v0 }
  0x46   :  { %538 = vmatpush1.bf16.msra.mxu0 %v2832_v40  ;;  %579 = vmatpush1.bf16.msra.mxu1 %v2834_v41 }
  0x47   :  { %539 = vmatprep.subr.bf16.mxu0 %v2836_v42  ;;  %580 = vmatprep.subr.bf16.mxu1 %v2840_v43 }
  0x4a   :  { %540 = vmatpush1.bf16.msra.mxu0 %v2844_v44  ;;  %581 = vmatpush1.bf16.msra.mxu1 %v2848_v45 }
  0x4b   :  { %541 = vmatprep.subr.bf16.mxu0 %v2852_v46  ;;  %582 = vmatprep.subr.bf16.mxu1 %v2854_v47 }
  0x4e   :  { %542 = vmatpush1.bf16.msra.mxu0 %v2858_v48  ;;  %583 = vmatpush1.bf16.msra.mxu1 %v2860_v49 }
  0x4f   :  { %543 = vmatprep.subr.bf16.mxu0 %v2862_v50  ;;  %584 = vmatprep.subr.bf16.mxu1 %v2866_v51 }
  0x52   :  { %544 = vmatpush1.bf16.msra.mxu0 %v2868_v52  ;;  %585 = vmatpush1.bf16.msra.mxu1 %v2870_v53 }
  0x53   :  { %545 = vmatprep.subr.bf16.mxu0 %v2872_v54  ;;  %586 = vmatprep.subr.bf16.mxu1 %v2874_v55 }
  0x56   :  { %546 = vmatpush1.bf16.msra.mxu0 %v2882_v56  ;;  %587 = vmatpush1.bf16.msra.mxu1 %v2884_v57 }
  0x57   :  { %547 = vmatprep.subr.bf16.mxu0 %v2888_v58  ;;  %588 = vmatprep.subr.bf16.mxu1 %v2890_v59 }
  0x5a   :  { %548 = vmatpush1.bf16.msra.mxu0 %v2894_v60  ;;  %589 = vmatpush1.bf16.msra.mxu1 %v2896_v61 }
  0x5b   :  { %549 = vmatprep.subr.bf16.mxu0 %v2900_v62  ;;  %590 = vmatprep.subr.bf16.mxu1 %v2902_v63 }
  0x5e   :  { %550 = vmatpush1.bf16.msra.mxu0 %v2906_v1  ;;  %591 = vmatpush1.bf16.msra.mxu1 %v2908_v2 }
  0x5f   :  { %664 = vmatprep.subr.bf16.mxu0 %v2785_v11  ;;  %705 = vmatprep.subr.bf16.mxu1 %v2787_v13 }
  0xf4   :  { %v212_v10 = vpop.f32.mrb[0].mxu0  ;;  %v255_v12 = vpop.f32.mrb[0].mxu1 }
  0xf5   :  { %v214_v16 = vpop.f32.mrb[1].mxu0  ;;  %v257_v17 = vpop.f32.mrb[1].mxu1  ;;  %v2967_v5 = vadd.f32 %v212_v10, %v134_v15 }
  0xf6   :  { %v216_v19 = vpop.f32.mrb[2].mxu0  ;;  %v259_v20 = vpop.f32.mrb[2].mxu1  ;;  %v2969_v27 = vadd.f32 %v214_v16, %v138_v18  ;;  %v2973_v8 = vadd.f32 %v257_v17, %v146_v14 }
  0xf7   :  { %v2959_v21 = vadd.f32 %v216_v19, %v134_v15  ;;  %v218_v22 = vpop.f32.mrb[3].mxu0  ;;  %v2961_v23 = vadd.f32 %v259_v20, %v142_v9  ;;  %v261_v24 = vpop.f32.mrb[3].mxu1  ;;  %v2976_v15 = vadd.f32 %v255_v12, %v142_v9 }
  0xf8   :  { %v2963_v25 = vadd.f32 %v218_v22, %v138_v18  ;;  %v2965_v26 = vadd.f32 %v261_v24, %v146_v14 }
 0x114   :  { %v458_v28 = vpop.f32.mrb[4].mxu0  ;;  %v499_v29 = vpop.f32.mrb[4].mxu1 }
 0x115   :  { %v506_v30 = vadd.f32 %v458_v28, %v2967_v5  ;;  %v460_v31 = vpop.f32.mrb[5].mxu0  ;;  %v501_v32 = vpop.f32.mrb[5].mxu1  ;;  %v508_v18 = vadd.f32 %v499_v29, %v2976_v15 }
 0x116   :  { %v507_v33 = vadd.f32 %v460_v31, %v2969_v27  ;;  %v462_v34 = vpop.f32.mrb[6].mxu0  ;;  %v503_v37 = vpop.f32.mrb[6].mxu1  ;;  %v509_v10 = vadd.f32 %v501_v32, %v2973_v8 }
 0x117   :  { %v2223_v3 = vmul.f32 -1.442695, %v506_v30  ;;  %v463_v4 = vpop.f32.mrb[7].mxu0  ;;  %v504_v6 = vpop.f32.mrb[7].mxu1 }
 0x118   :  { %v2224_v7 = vmul.f32 -1.442695, %v507_v33  ;;  %v2225_v16 = vmul.f32 -1.442695, %v509_v10 }
 0x119   :  { %2437 = vpow2.f32 %v2223_v3 }
 0x11a   :  { %2439 = vpow2.f32 %v2224_v7 }
 0x11b   :  { %2441 = vpow2.f32 %v2225_v16 }
 0x11c   :  { %2443 = vtanh.f32 %v508_v18 }
 0x123   :  { %v2438_v19 = vpop.eup %2437 }
 0x124   :  { %v2440_v20 = vpop.eup %2439  ;;  %v513_v22 = vadd.f32 1.0, %v2438_v19 }
 0x125   :  { %v519_v24 = vadd.f32 1.0, %v2440_v20  ;;  %v2442_v28 = vpop.eup %2441 }
 0x126   :  { %2445 = vrcp.f32 %v513_v22  ;;  %v2444_v30 = vpop.eup %2443  ;;  %v526_v33 = vadd.f32 1.0, %v2442_v28 }
 0x127   :  { %2447 = vrcp.f32 %v519_v24 }
 0x128   :  { %2449 = vrcp.f32 %v526_v33 }
 0x130   :  { %v2446_v14 = vpop.eup %2445 }
 0x131   :  { %v2448_v17 = vpop.eup %2447  ;;  %v530_v31 = vmul.f32 %v2446_v14, %v2444_v30 }
 0x132   :  { %v529_v32 = vmul.f32 0.0, %v2448_v17  ;;  %v2450_v12 = vpop.eup %2449 }
 0x134   :  { %v2979_v9 = vadd.f32 %v530_v31, %v529_v32 }
 0x136   :  { %2451 = vtanh.f32 %v2979_v9 }
 0x140   :  { %v2452_v29 = vpop.eup %2451 }
 0x141   :  { %v533_v34 = vmul.f32 %v2452_v29, %v2450_v12 }
 0x143   :  { %v534_v37 = vpack.c.bf16 %v533_v34, %v533_v34 }
 0x145   :  { %568 = vmatmul.mubr.bf16.vlgmr.msra.gmra.mrb[8].mxu0 %v534_v37  ;;  %609 = vmatmul.mubr.bf16.vlgmr.msra.gmra.mrb[8].mxu1 %v534_v37 }
 0x146   :  { %665 = vmatpush1.bf16.msra.mxu0 %v2820_v35  ;;  %706 = vmatpush1.bf16.msra.mxu1 %v2822_v36 }
 0x147   :  { %666 = vmatprep.subr.bf16.mxu0 %v2824_v38  ;;  %707 = vmatprep.subr.bf16.mxu1 %v2826_v39 }
 0x148   :  { %696 = vmatprep.mubr.bf16.mxu0 %v2712_v0  ;;  %737 = vmatprep.mubr.bf16.mxu1 %v2712_v0 }
 0x14a   :  { %667 = vmatpush1.bf16.msra.mxu0 %v2832_v40  ;;  %708 = vmatpush1.bf16.msra.mxu1 %v2834_v41 }
 0x14b   :  { %668 = vmatprep.subr.bf16.mxu0 %v2836_v42  ;;  %709 = vmatprep.subr.bf16.mxu1 %v2840_v43 }
 0x14e   :  { %669 = vmatpush1.bf16.msra.mxu0 %v2844_v44  ;;  %710 = vmatpush1.bf16.msra.mxu1 %v2848_v45 }
 0x14f   :  { %670 = vmatprep.subr.bf16.mxu0 %v2852_v46  ;;  %711 = vmatprep.subr.bf16.mxu1 %v2854_v47 }
 0x152   :  { %671 = vmatpush1.bf16.msra.mxu0 %v2858_v48  ;;  %712 = vmatpush1.bf16.msra.mxu1 %v2860_v49 }
 0x153   :  { %672 = vmatprep.subr.bf16.mxu0 %v2862_v50  ;;  %713 = vmatprep.subr.bf16.mxu1 %v2866_v51 }
 0x156   :  { %673 = vmatpush1.bf16.msra.mxu0 %v2868_v52  ;;  %714 = vmatpush1.bf16.msra.mxu1 %v2870_v53 }
 0x157   :  { %674 = vmatprep.subr.bf16.mxu0 %v2872_v54  ;;  %715 = vmatprep.subr.bf16.mxu1 %v2874_v55 }
 0x15a   :  { %675 = vmatpush1.bf16.msra.mxu0 %v2882_v56  ;;  %716 = vmatpush1.bf16.msra.mxu1 %v2884_v57 }
 0x15b   :  { %676 = vmatprep.subr.bf16.mxu0 %v2888_v58  ;;  %717 = vmatprep.subr.bf16.mxu1 %v2890_v59 }
 0x15e   :  { %677 = vmatpush1.bf16.msra.mxu0 %v2894_v60  ;;  %718 = vmatpush1.bf16.msra.mxu1 %v2896_v61 }
 0x15f   :  { %678 = vmatprep.subr.bf16.mxu0 %v2900_v62  ;;  %719 = vmatprep.subr.bf16.mxu1 %v2902_v63 }
 0x162   :  { %679 = vmatpush1.bf16.msra.mxu0 %v2906_v1  ;;  %720 = vmatpush1.bf16.msra.mxu1 %v2908_v2 }
 0x163   :  { %793 = vmatprep.subr.bf16.mxu0 %v2785_v11  ;;  %834 = vmatprep.subr.bf16.mxu1 %v2787_v13 }
 0x218   :  { %v569_v3 = vpop.f32.mrb[8].mxu0  ;;  %v610_v4 = vpop.f32.mrb[8].mxu1 }
 0x219   :  { %v621_v6 = vrot.slane %v569_v3, 6  ;;  %v571_v7 = vpop.f32.mrb[9].mxu0  ;;  %v612_v10 = vpop.f32.mrb[9].mxu1  ;;  %v623_v33 = vrot.slane %v610_v4, 6 }
 0x21a   :  { %v622_v16 = vrot.slane %v571_v7, 6  ;;  %v573_v18 = vpop.f32.mrb[10].mxu0  ;;  %v614_v19 = vpop.f32.mrb[10].mxu1  ;;  %v624_v17 = vrot.slane %v612_v10, 6  ;;  %v653_v10 = vrot.slane %v2979_v9, 6 }
 0x21b   :  { %v629_v20 = vadd.f32 %v621_v6, %v2967_v5  ;;  %v574_v22 = vpop.f32.mrb[11].mxu0  ;;  %v615_v24 = vpop.f32.mrb[11].mxu1  ;;  %v631_v12 = vadd.f32 %v623_v33, %v2976_v15 }
 0x21c   :  { %v630_v28 = vadd.f32 %v622_v16, %v2969_v27  ;;  %v632_v31 = vadd.f32 %v624_v17, %v2973_v8 }
 0x21d   :  { %v2226_v30 = vmul.f32 -1.442695, %v629_v20 }
 0x21e   :  { %v2227_v14 = vmul.f32 -1.442695, %v630_v28  ;;  %v2228_v32 = vmul.f32 -1.442695, %v632_v31 }
 0x21f   :  { %2453 = vpow2.f32 %v2226_v30 }
 0x220   :  { %2455 = vpow2.f32 %v2227_v14 }
 0x221   :  { %2457 = vpow2.f32 %v2228_v32 }
 0x222   :  { %2459 = vtanh.f32 %v631_v12 }
 0x229   :  { %v2454_v29 = vpop.eup %2453 }
 0x22a   :  { %v2456_v34 = vpop.eup %2455  ;;  %v636_v37 = vadd.f32 1.0, %v2454_v29 }
 0x22b   :  { %v642_v3 = vadd.f32 1.0, %v2456_v34  ;;  %v2458_v6 = vpop.eup %2457 }
 0x22c   :  { %2461 = vrcp.f32 %v636_v37  ;;  %v2460_v7 = vpop.eup %2459  ;;  %v649_v20 = vadd.f32 1.0, %v2458_v6 }
 0x22d   :  { %2463 = vrcp.f32 %v642_v3 }
 0x22e   :  { %2465 = vrcp.f32 %v649_v20 }
 0x236   :  { %v2462_v16 = vpop.eup %2461 }
 0x237   :  { %v2464_v18 = vpop.eup %2463  ;;  %v656_v19 = vmul.f32 %v2462_v16, %v2460_v7 }
 0x238   :  { %v655_v4 = vmul.f32 %v2464_v18, %v653_v10  ;;  %v2466_v24 = vpop.eup %2465 }
 0x23a   :  { %v3021_v22 = vadd.f32 %v656_v19, %v655_v4 }
 0x23c   :  { %2467 = vtanh.f32 %v3021_v22 }
 0x246   :  { %v2468_v28 = vpop.eup %2467 }
 0x247   :  { %v659_v30 = vmul.f32 %v2468_v28, %v2466_v24 }
 0x249   :  { %v660_v14 = vpack.c.bf16 %v659_v30, %v659_v30 }
 0x24b   :  { %v662_v17 = vrot.slane %v660_v14, 1 }
 0x24d   :  { %697 = vmatmul.mubr.bf16.vlgmr.msra.gmra.mrb[12].mxu0 %v662_v17  ;;  %738 = vmatmul.mubr.bf16.vlgmr.msra.gmra.mrb[12].mxu1 %v662_v17 }
 0x24e   :  { %794 = vmatpush1.bf16.msra.mxu0 %v2820_v35  ;;  %835 = vmatpush1.bf16.msra.mxu1 %v2822_v36 }
 0x24f   :  { %795 = vmatprep.subr.bf16.mxu0 %v2824_v38  ;;  %836 = vmatprep.subr.bf16.mxu1 %v2826_v39 }
 0x250   :  { %825 = vmatprep.mubr.bf16.mxu0 %v2712_v0  ;;  %866 = vmatprep.mubr.bf16.mxu1 %v2712_v0 }
 0x252   :  { %796 = vmatpush1.bf16.msra.mxu0 %v2832_v40  ;;  %837 = vmatpush1.bf16.msra.mxu1 %v2834_v41 }
 0x253   :  { %797 = vmatprep.subr.bf16.mxu0 %v2836_v42  ;;  %838 = vmatprep.subr.bf16.mxu1 %v2840_v43 }
 0x256   :  { %798 = vmatpush1.bf16.msra.mxu0 %v2844_v44  ;;  %839 = vmatpush1.bf16.msra.mxu1 %v2848_v45 }
 0x257   :  { %799 = vmatprep.subr.bf16.mxu0 %v2852_v46  ;;  %840 = vmatprep.subr.bf16.mxu1 %v2854_v47 }
 0x25a   :  { %800 = vmatpush1.bf16.msra.mxu0 %v2858_v48  ;;  %841 = vmatpush1.bf16.msra.mxu1 %v2860_v49 }
 0x25b   :  { %801 = vmatprep.subr.bf16.mxu0 %v2862_v50  ;;  %842 = vmatprep.subr.bf16.mxu1 %v2866_v51 }
 0x25e   :  { %802 = vmatpush1.bf16.msra.mxu0 %v2868_v52  ;;  %843 = vmatpush1.bf16.msra.mxu1 %v2870_v53 }
 0x25f   :  { %803 = vmatprep.subr.bf16.mxu0 %v2872_v54  ;;  %844 = vmatprep.subr.bf16.mxu1 %v2874_v55 }
 0x262   :  { %804 = vmatpush1.bf16.msra.mxu0 %v2882_v56  ;;  %845 = vmatpush1.bf16.msra.mxu1 %v2884_v57 }
 0x263   :  { %805 = vmatprep.subr.bf16.mxu0 %v2888_v58  ;;  %846 = vmatprep.subr.bf16.mxu1 %v2890_v59 }
 0x266   :  { %806 = vmatpush1.bf16.msra.mxu0 %v2894_v60  ;;  %847 = vmatpush1.bf16.msra.mxu1 %v2896_v61 }
 0x267   :  { %807 = vmatprep.subr.bf16.mxu0 %v2900_v62  ;;  %848 = vmatprep.subr.bf16.mxu1 %v2902_v63 }
 0x26a   :  { %808 = vmatpush1.bf16.msra.mxu0 %v2906_v1  ;;  %849 = vmatpush1.bf16.msra.mxu1 %v2908_v2 }
 0x26b   :  { %922 = vmatprep.subr.bf16.mxu0 %v2785_v11  ;;  %963 = vmatprep.subr.bf16.mxu1 %v2787_v13 }
 0x320   :  { %v698_v9 = vpop.f32.mrb[12].mxu0  ;;  %v739_v31 = vpop.f32.mrb[12].mxu1 }
 0x321   :  { %v750_v33 = vrot.slane %v698_v9, 4  ;;  %v700_v32 = vpop.f32.mrb[13].mxu0  ;;  %v741_v12 = vpop.f32.mrb[13].mxu1  ;;  %v752_v4 = vrot.slane %v739_v31, 4 }
 0x322   :  { %v751_v29 = vrot.slane %v700_v32, 4  ;;  %v702_v34 = vpop.f32.mrb[14].mxu0  ;;  %v743_v37 = vpop.f32.mrb[14].mxu1  ;;  %v753_v19 = vrot.slane %v741_v12, 4  ;;  %v782_v12 = vrot.slane %v3021_v22, 6 }
 0x323   :  { %v758_v3 = vadd.f32 %v750_v33, %v2967_v5  ;;  %v703_v6 = vpop.f32.mrb[15].mxu0  ;;  %v744_v7 = vpop.f32.mrb[15].mxu1  ;;  %v760_v28 = vadd.f32 %v752_v4, %v2976_v15 }
 0x324   :  { %v759_v16 = vadd.f32 %v751_v29, %v2969_v27  ;;  %v761_v20 = vadd.f32 %v753_v19, %v2973_v8 }
 0x325   :  { %v2229_v10 = vmul.f32 -1.442695, %v758_v3 }
 0x326   :  { %v2230_v18 = vmul.f32 -1.442695, %v759_v16  ;;  %v2231_v24 = vmul.f32 -1.442695, %v761_v20 }
 0x327   :  { %2469 = vpow2.f32 %v2229_v10 }
 0x328   :  { %2471 = vpow2.f32 %v2230_v18 }
 0x329   :  { %2473 = vpow2.f32 %v2231_v24 }
 0x32a   :  { %2475 = vtanh.f32 %v760_v28 }
 0x331   :  { %v2470_v30 = vpop.eup %2469 }
 0x332   :  { %v2472_v14 = vpop.eup %2471  ;;  %v765_v17 = vadd.f32 1.0, %v2470_v30 }
 0x333   :  { %v771_v9 = vadd.f32 1.0, %v2472_v14  ;;  %v2474_v33 = vpop.eup %2473 }
 0x334   :  { %2477 = vrcp.f32 %v765_v17  ;;  %v2476_v32 = vpop.eup %2475  ;;  %v778_v3 = vadd.f32 1.0, %v2474_v33 }
 0x335   :  { %2479 = vrcp.f32 %v771_v9 }
 0x336   :  { %2481 = vrcp.f32 %v778_v3 }
 0x33e   :  { %v2478_v29 = vpop.eup %2477 }
 0x33f   :  { %v2480_v34 = vpop.eup %2479  ;;  %v785_v37 = vmul.f32 %v2478_v29, %v2476_v32 }
 0x340   :  { %v784_v31 = vmul.f32 %v2480_v34, %v782_v12  ;;  %v2482_v7 = vpop.eup %2481 }
 0x342   :  { %v3063_v6 = vadd.f32 %v785_v37, %v784_v31 }
 0x344   :  { %2483 = vtanh.f32 %v3063_v6 }
 0x34e   :  { %v2484_v16 = vpop.eup %2483 }
 0x34f   :  { %v788_v10 = vmul.f32 %v2484_v16, %v2482_v7 }
 0x351   :  { %v789_v18 = vpack.c.bf16 %v788_v10, %v788_v10 }
 0x353   :  { %v791_v19 = vrot.slane %v789_v18, 2 }
 0x355   :  { %826 = vmatmul.mubr.bf16.vlgmr.msra.gmra.mrb[16].mxu0 %v791_v19  ;;  %867 = vmatmul.mubr.bf16.vlgmr.msra.gmra.mrb[16].mxu1 %v791_v19 }
 0x356   :  { %923 = vmatpush1.bf16.msra.mxu0 %v2820_v35  ;;  %964 = vmatpush1.bf16.msra.mxu1 %v2822_v36 }
 0x357   :  { %924 = vmatprep.subr.bf16.mxu0 %v2824_v38  ;;  %965 = vmatprep.subr.bf16.mxu1 %v2826_v39 }
 0x358   :  { %954 = vmatprep.mubr.bf16.mxu0 %v2712_v0  ;;  %995 = vmatprep.mubr.bf16.mxu1 %v2712_v0 }
 0x35a   :  { %925 = vmatpush1.bf16.msra.mxu0 %v2832_v40  ;;  %966 = vmatpush1.bf16.msra.mxu1 %v2834_v41 }
 0x35b   :  { %926 = vmatprep.subr.bf16.mxu0 %v2836_v42  ;;  %967 = vmatprep.subr.bf16.mxu1 %v2840_v43 }
 0x35e   :  { %927 = vmatpush1.bf16.msra.mxu0 %v2844_v44  ;;  %968 = vmatpush1.bf16.msra.mxu1 %v2848_v45 }
 0x35f   :  { %928 = vmatprep.subr.bf16.mxu0 %v2852_v46  ;;  %969 = vmatprep.subr.bf16.mxu1 %v2854_v47 }
 0x362   :  { %929 = vmatpush1.bf16.msra.mxu0 %v2858_v48  ;;  %970 = vmatpush1.bf16.msra.mxu1 %v2860_v49 }
 0x363   :  { %930 = vmatprep.subr.bf16.mxu0 %v2862_v50  ;;  %971 = vmatprep.subr.bf16.mxu1 %v2866_v51 }
 0x366   :  { %931 = vmatpush1.bf16.msra.mxu0 %v2868_v52  ;;  %972 = vmatpush1.bf16.msra.mxu1 %v2870_v53 }
 0x367   :  { %932 = vmatprep.subr.bf16.mxu0 %v2872_v54  ;;  %973 = vmatprep.subr.bf16.mxu1 %v2874_v55 }
 0x36a   :  { %933 = vmatpush1.bf16.msra.mxu0 %v2882_v56  ;;  %974 = vmatpush1.bf16.msra.mxu1 %v2884_v57 }
 0x36b   :  { %934 = vmatprep.subr.bf16.mxu0 %v2888_v58  ;;  %975 = vmatprep.subr.bf16.mxu1 %v2890_v59 }
 0x36e   :  { %935 = vmatpush1.bf16.msra.mxu0 %v2894_v60  ;;  %976 = vmatpush1.bf16.msra.mxu1 %v2896_v61 }
 0x36f   :  { %936 = vmatprep.subr.bf16.mxu0 %v2900_v62  ;;  %977 = vmatprep.subr.bf16.mxu1 %v2902_v63 }
 0x372   :  { %937 = vmatpush1.bf16.msra.mxu0 %v2906_v1  ;;  %978 = vmatpush1.bf16.msra.mxu1 %v2908_v2 }
 0x373   :  { %1036 = vmatprep.subr.bf16.mxu0 %v2785_v11  ;;  %1077 = vmatprep.subr.bf16.mxu1 %v2787_v13 }
 0x428   :  { %v827_v22 = vpop.f32.mrb[16].mxu0  ;;  %v868_v20 = vpop.f32.mrb[16].mxu1 }
 0x429   :  { %v879_v4 = vrot.slane %v827_v22, 2  ;;  %v829_v24 = vpop.f32.mrb[17].mxu0  ;;  %v870_v28 = vpop.f32.mrb[17].mxu1  ;;  %v881_v13 = vrot.slane %v868_v20, 2  ;;  %v911_v22 = vrot.slane %v3063_v6, 6 }
 0x42a   :  { %v880_v30 = vrot.slane %v829_v24, 2  ;;  %v831_v14 = vpop.f32.mrb[18].mxu0  ;;  %v872_v17 = vpop.f32.mrb[18].mxu1  ;;  %v882_v37 = vrot.slane %v870_v28, 2 }
 0x42b   :  { %v887_v9 = vadd.f32 %v879_v4, %v2967_v5  ;;  %v832_v33 = vpop.f32.mrb[19].mxu0  ;;  %v873_v32 = vpop.f32.mrb[19].mxu1  ;;  %v889_v31 = vadd.f32 %v881_v13, %v2976_v15 }
 0x42c   :  { %v888_v29 = vadd.f32 %v880_v30, %v2969_v27  ;;  %v890_v11 = vadd.f32 %v882_v37, %v2973_v8 }
 0x42d   :  { %v2232_v12 = vmul.f32 -1.442695, %v887_v9 }
 0x42e   :  { %v2233_v34 = vmul.f32 -1.442695, %v888_v29  ;;  %v2234_v3 = vmul.f32 -1.442695, %v890_v11 }
 0x42f   :  { %2485 = vpow2.f32 %v2232_v12 }
 0x430   :  { %2487 = vpow2.f32 %v2233_v34 }
 0x431   :  { %2489 = vpow2.f32 %v2234_v3 }
 0x432   :  { %2491 = vtanh.f32 %v889_v31 }
 0x439   :  { %v2486_v7 = vpop.eup %2485 }
 0x43a   :  { %v2488_v16 = vpop.eup %2487  ;;  %v894_v10 = vadd.f32 1.0, %v2486_v7 }
 0x43b   :  { %v900_v5 = vadd.f32 1.0, %v2488_v16  ;;  %v2490_v27 = vpop.eup %2489 }
 0x43c   :  { %2493 = vrcp.f32 %v894_v10  ;;  %v2492_v18 = vpop.eup %2491  ;;  %v907_v8 = vadd.f32 1.0, %v2490_v27 }
 0x43d   :  { %2495 = vrcp.f32 %v900_v5 }
 0x43e   :  { %2497 = vrcp.f32 %v907_v8 }
 0x446   :  { %v2494_v19 = vpop.eup %2493 }
 0x447   :  { %v2496_v4 = vpop.eup %2495  ;;  %v914_v24 = vmul.f32 %v2494_v19, %v2492_v18 }
 0x448   :  { %v913_v20 = vmul.f32 %v2496_v4, %v911_v22  ;;  %v2498_v15 = vpop.eup %2497 }
 0x44a   :  { %v3105_v28 = vadd.f32 %v914_v24, %v913_v20 }
 0x44c   :  { %2499 = vtanh.f32 %v3105_v28  ;;  %v1028_v19 = vrot.slane %v3105_v28, 6  ;;  %v3157_v28 = vld [vmem:[#allocation2 + $0x8] ss:$16 sps:$4 sm:$0xff]  }
 0x456   :  { %v2500_v30 = vpop.eup %2499 }
 0x457   :  { %v917_v14 = vmul.f32 %v2500_v30, %v2498_v15 }
 0x459   :  { %v918_v17 = vpack.c.bf16 %v917_v14, %v917_v14 }
 0x45b   :  { %v920_v9 = vrot.slane %v918_v17, 3 }
 0x45d   :  { %955 = vmatmul.mubr.bf16.vlgmr.msra.gmra.mrb[20].mxu0 %v920_v9  ;;  %996 = vmatmul.mubr.bf16.vlgmr.msra.gmra.mrb[20].mxu1 %v920_v9  ;;  %v3154_v9 = vld [vmem:[#allocation2] ss:$16 sps:$4 sm:$0xff]  }
 0x45e   :  { %1037 = vmatpush1.bf16.msra.mxu0 %v2820_v35  ;;  %1078 = vmatpush1.bf16.msra.mxu1 %v2822_v36  ;;  %v3140_v35 = vld [vmem:[#allocation2 + $0x4] ss:$16 sps:$4 sm:$0xff]   ;;  %v3143_v36 = vld [vmem:[#allocation2 + $0xc] ss:$16 sps:$4 sm:$0xff]  }
 0x45f   :  { %1038 = vmatprep.subr.bf16.mxu0 %v2824_v38  ;;  %1079 = vmatprep.subr.bf16.mxu1 %v2826_v39 }
 0x460   :  { %1068 = vmatprep.mubr.bf16.mxu0 %v2712_v0  ;;  %1109 = vmatprep.mubr.bf16.mxu1 %v2712_v0 }
 0x462   :  { %1039 = vmatpush1.bf16.msra.mxu0 %v2832_v40  ;;  %1080 = vmatpush1.bf16.msra.mxu1 %v2834_v41 }
 0x463   :  { %1040 = vmatprep.subr.bf16.mxu0 %v2836_v42  ;;  %1081 = vmatprep.subr.bf16.mxu1 %v2840_v43 }
 0x466   :  { %1041 = vmatpush1.bf16.msra.mxu0 %v2844_v44  ;;  %1082 = vmatpush1.bf16.msra.mxu1 %v2848_v45 }
 0x467   :  { %1042 = vmatprep.subr.bf16.mxu0 %v2852_v46  ;;  %1083 = vmatprep.subr.bf16.mxu1 %v2854_v47 }
 0x46a   :  { %1043 = vmatpush1.bf16.msra.mxu0 %v2858_v48  ;;  %1084 = vmatpush1.bf16.msra.mxu1 %v2860_v49 }
 0x46b   :  { %1044 = vmatprep.subr.bf16.mxu0 %v2862_v50  ;;  %1085 = vmatprep.subr.bf16.mxu1 %v2866_v51 }
 0x46e   :  { %1045 = vmatpush1.bf16.msra.mxu0 %v2868_v52  ;;  %1086 = vmatpush1.bf16.msra.mxu1 %v2870_v53 }
 0x46f   :  { %1046 = vmatprep.subr.bf16.mxu0 %v2872_v54  ;;  %1087 = vmatprep.subr.bf16.mxu1 %v2874_v55 }
 0x472   :  { %1047 = vmatpush1.bf16.msra.mxu0 %v2882_v56  ;;  %1088 = vmatpush1.bf16.msra.mxu1 %v2884_v57 }
 0x473   :  { %1048 = vmatprep.subr.bf16.mxu0 %v2888_v58  ;;  %1089 = vmatprep.subr.bf16.mxu1 %v2890_v59 }
 0x476   :  { %1049 = vmatpush1.bf16.msra.mxu0 %v2894_v60  ;;  %1090 = vmatpush1.bf16.msra.mxu1 %v2896_v61 }
 0x477   :  { %1050 = vmatprep.subr.bf16.mxu0 %v2900_v62  ;;  %1091 = vmatprep.subr.bf16.mxu1 %v2902_v63 }
 0x47a   :  { %1051 = vmatpush1.bf16.msra.mxu0 %v2906_v1  ;;  %1092 = vmatpush1.bf16.msra.mxu1 %v2908_v2 }
 0x47b   :  { %1165 = vmatprep.subr.bf16.mxu0 %v3140_v35  ;;  %1206 = vmatprep.subr.bf16.mxu1 %v3143_v36 }
 0x530   :  { %v956_v38 = vpop.f32.mrb[20].mxu0  ;;  %v997_v39 = vpop.f32.mrb[20].mxu1 }
 0x531   :  { %v1004_v40 = vadd.f32 %v956_v38, %v2959_v21  ;;  %v958_v41 = vpop.f32.mrb[21].mxu0  ;;  %v999_v42 = vpop.f32.mrb[21].mxu1  ;;  %v1006_v3 = vadd.f32 %v997_v39, %v2961_v23  ;;  %v3160_v38 = vld [vmem:[#allocation2 + $0x24] ss:$16 sps:$4 sm:$0xff]   ;;  %v3163_v39 = vld [vmem:[#allocation2 + $0x2c] ss:$16 sps:$4 sm:$0xff]  }
 0x532   :  { %v1005_v6 = vadd.f32 %v958_v41, %v2963_v25  ;;  %v960_v33 = vpop.f32.mrb[22].mxu0  ;;  %v1001_v32 = vpop.f32.mrb[22].mxu1  ;;  %v1007_v11 = vadd.f32 %v999_v42, %v2965_v26  ;;  %v3171_v41 = vld [vmem:[#allocation2 + $0x28] ss:$16 sps:$4 sm:$0xff]   ;;  %v3174_v42 = vld [vmem:[#allocation2 + $0x44] ss:$16 sps:$4 sm:$0xff]  }
 0x533   :  { %v2235_v29 = vmul.f32 -1.442695, %v1004_v40  ;;  %v961_v12 = vpop.f32.mrb[23].mxu0  ;;  %v1002_v34 = vpop.f32.mrb[23].mxu1  ;;  %v3168_v40 = vld [vmem:[#allocation2 + $0x20] ss:$16 sps:$4 sm:$0xff]  }
 0x534   :  { %v2236_v37 = vmul.f32 -1.442695, %v1005_v6  ;;  %v2237_v13 = vmul.f32 -1.442695, %v1007_v11 }
 0x535   :  { %2501 = vpow2.f32 %v2235_v29 }
 0x536   :  { %2503 = vpow2.f32 %v2236_v37 }
 0x537   :  { %2505 = vpow2.f32 %v2237_v13 }
 0x538   :  { %2507 = vtanh.f32 %v1006_v3 }
 0x53f   :  { %v2502_v31 = vpop.eup %2501 }
 0x540   :  { %v2504_v7 = vpop.eup %2503  ;;  %v1011_v16 = vadd.f32 1.0, %v2502_v31 }
 0x541   :  { %v1017_v10 = vadd.f32 1.0, %v2504_v7  ;;  %v2506_v5 = vpop.eup %2505 }
 0x542   :  { %2509 = vrcp.f32 %v1011_v16  ;;  %v2508_v27 = vpop.eup %2507  ;;  %v1024_v24 = vadd.f32 1.0, %v2506_v5  ;;  %v2638_v16 = vld [vmem:[#allocation2 + $0x4c] ss:$16 sps:$4 sm:$0xff]   ;;  %v2640_v5 = vld [vmem:[#allocation2 + $0x48] ss:$16 sps:$4 sm:$0xff]  }
 0x543   :  { %2511 = vrcp.f32 %v1017_v10  ;;  %v2639_v10 = vld [vmem:[#allocation2 + $0x40] ss:$16 sps:$4 sm:$0xff]  }
 0x544   :  { %2513 = vrcp.f32 %v1024_v24  ;;  %v2646_v24 = vld [vmem:[#allocation2 + $0x8c] ss:$16 sps:$4 sm:$0xff]  }
 0x54c   :  { %v2510_v18 = vpop.eup %2509 }
 0x54d   :  { %v2512_v22 = vpop.eup %2511  ;;  %v1031_v4 = vmul.f32 %v2510_v18, %v2508_v27  ;;  %v2641_v27 = vld [vmem:[#allocation2 + $0x64] ss:$16 sps:$4 sm:$0xff]   ;;  %v2642_v18 = vld [vmem:[#allocation2 + $0x6c] ss:$16 sps:$4 sm:$0xff]  }
 0x54e   :  { %v1030_v8 = vmul.f32 %v2512_v22, %v1028_v19  ;;  %v2514_v15 = vpop.eup %2513  ;;  %v2643_v19 = vld [vmem:[#allocation2 + $0x60] ss:$16 sps:$4 sm:$0xff]   ;;  %v2644_v22 = vld [vmem:[#allocation2 + $0x68] ss:$16 sps:$4 sm:$0xff]  }
 0x550   :  { %v3151_v20 = vadd.f32 %v1031_v4, %v1030_v8  ;;  %v2645_v4 = vld [vmem:[#allocation2 + $0x84] ss:$16 sps:$4 sm:$0xff]   ;;  %v2647_v8 = vld [vmem:[#allocation2 + $0x80] ss:$16 sps:$4 sm:$0xff]  }
 0x552   :  { %2515 = vtanh.f32 %v3151_v20  ;;  %v1154_v33 = vrot.slane %v3151_v20, 6  ;;  %v2648_v20 = vld [vmem:[#allocation2 + $0x88] ss:$16 sps:$4 sm:$0xff]  }
 0x55c   :  { %v2516_v30 = vpop.eup %2515 }
 0x55d   :  { %v1034_v14 = vmul.f32 %v2516_v30, %v2514_v15  ;;  %v2649_v15 = vld [vmem:[#allocation2 + $0xa4] ss:$16 sps:$4 sm:$0xff]   ;;  %v2650_v30 = vld [vmem:[#allocation2 + $0xac] ss:$16 sps:$4 sm:$0xff]  }
 0x55f   :  { %v1035_v17 = vpack.c.bf16 %v1034_v14, %v1034_v14  ;;  %v2651_v14 = vld [vmem:[#allocation2 + $0xa0] ss:$16 sps:$4 sm:$0xff]  }
 0x561   :  { %1069 = vmatmul.mubr.bf16.vlgmr.msra.gmra.mrb[24].mxu0 %v1035_v17  ;;  %1110 = vmatmul.mubr.bf16.vlgmr.msra.gmra.mrb[24].mxu1 %v1035_v17  ;;  %v2652_v17 = vld [vmem:[#allocation2 + $0xa8] ss:$16 sps:$4 sm:$0xff]  }
 0x562   :  { %1166 = vmatpush1.bf16.msra.mxu0 %v3154_v9  ;;  %1207 = vmatpush1.bf16.msra.mxu1 %v3157_v28 }
 0x563   :  { %1167 = vmatprep.subr.bf16.mxu0 %v3160_v38  ;;  %1208 = vmatprep.subr.bf16.mxu1 %v3163_v39 }
 0x564   :  { %1197 = vmatprep.mubr.bf16.mxu0 %v2712_v0  ;;  %1238 = vmatprep.mubr.bf16.mxu1 %v2712_v0 }
 0x566   :  { %1168 = vmatpush1.bf16.msra.mxu0 %v3168_v40  ;;  %1209 = vmatpush1.bf16.msra.mxu1 %v3171_v41 }
 0x567   :  { %1169 = vmatprep.subr.bf16.mxu0 %v3174_v42  ;;  %1210 = vmatprep.subr.bf16.mxu1 %v2840_v43 }
 0x56a   :  { %1170 = vmatpush1.bf16.msra.mxu0 %v2844_v44  ;;  %1211 = vmatpush1.bf16.msra.mxu1 %v2848_v45 }
 0x56b   :  { %1171 = vmatprep.subr.bf16.mxu0 %v2852_v46  ;;  %1212 = vmatprep.subr.bf16.mxu1 %v2854_v47 }
 0x56e   :  { %1172 = vmatpush1.bf16.msra.mxu0 %v2858_v48  ;;  %1213 = vmatpush1.bf16.msra.mxu1 %v2860_v49 }
 0x56f   :  { %1173 = vmatprep.subr.bf16.mxu0 %v2862_v50  ;;  %1214 = vmatprep.subr.bf16.mxu1 %v2866_v51 }
 0x572   :  { %1174 = vmatpush1.bf16.msra.mxu0 %v2868_v52  ;;  %1215 = vmatpush1.bf16.msra.mxu1 %v2870_v53 }
 0x573   :  { %1175 = vmatprep.subr.bf16.mxu0 %v2872_v54  ;;  %1216 = vmatprep.subr.bf16.mxu1 %v2874_v55 }
 0x576   :  { %1176 = vmatpush1.bf16.msra.mxu0 %v2882_v56  ;;  %1217 = vmatpush1.bf16.msra.mxu1 %v2884_v57 }
 0x577   :  { %1177 = vmatprep.subr.bf16.mxu0 %v2888_v58  ;;  %1218 = vmatprep.subr.bf16.mxu1 %v2890_v59 }
 0x57a   :  { %1178 = vmatpush1.bf16.msra.mxu0 %v2894_v60  ;;  %1219 = vmatpush1.bf16.msra.mxu1 %v2896_v61 }
 0x57b   :  { %1179 = vmatprep.subr.bf16.mxu0 %v2900_v62  ;;  %1220 = vmatprep.subr.bf16.mxu1 %v2902_v63 }
 0x57e   :  { %1180 = vmatpush1.bf16.msra.mxu0 %v2906_v1  ;;  %1221 = vmatpush1.bf16.msra.mxu1 %v2908_v2 }
 0x57f   :  { %1294 = vmatprep.subr.bf16.mxu0 %v3140_v35  ;;  %1335 = vmatprep.subr.bf16.mxu1 %v3143_v36 }
 0x634   :  { %v1070_v43 = vpop.f32.mrb[24].mxu0  ;;  %v1111_v44 = vpop.f32.mrb[24].mxu1 }
 0x635   :  { %v1122_v45 = vrot.slane %v1070_v43, 6  ;;  %v1072_v46 = vpop.f32.mrb[25].mxu0  ;;  %v1113_v47 = vpop.f32.mrb[25].mxu1  ;;  %v1124_v59 = vrot.slane %v1111_v44, 6  ;;  %v2660_v43 = vld [vmem:[#allocation2 + $0xe8] ss:$16 sps:$4 sm:$0xff]  }
 0x636   :  { %v1123_v48 = vrot.slane %v1072_v46, 6  ;;  %v1074_v49 = vpop.f32.mrb[26].mxu0  ;;  %v1115_v50 = vpop.f32.mrb[26].mxu1  ;;  %v1125_v57 = vrot.slane %v1113_v47, 6 }
 0x637   :  { %v1130_v51 = vadd.f32 %v1122_v45, %v2959_v21  ;;  %v1075_v52 = vpop.f32.mrb[27].mxu0  ;;  %v1116_v53 = vpop.f32.mrb[27].mxu1  ;;  %v1132_v61 = vadd.f32 %v1124_v59, %v2961_v23 }
 0x638   :  { %v1131_v54 = vadd.f32 %v1123_v48, %v2963_v25  ;;  %v1133_v58 = vadd.f32 %v1125_v57, %v2965_v26 }
 0x639   :  { %v2238_v55 = vmul.f32 -1.442695, %v1130_v51 }
 0x63a   :  { %v2239_v56 = vmul.f32 -1.442695, %v1131_v54  ;;  %v2240_v60 = vmul.f32 -1.442695, %v1133_v58 }
 0x63b   :  { %2517 = vpow2.f32 %v2238_v55 }
 0x63c   :  { %2519 = vpow2.f32 %v2239_v56 }
 0x63d   :  { %2521 = vpow2.f32 %v2240_v60 }
 0x63e   :  { %2523 = vtanh.f32 %v1132_v61 }
 0x645   :  { %v2518_v62 = vpop.eup %2517 }
 0x646   :  { %v2520_v63 = vpop.eup %2519  ;;  %v1137_v1 = vadd.f32 1.0, %v2518_v62 }
 0x647   :  { %v1143_v2 = vadd.f32 1.0, %v2520_v63  ;;  %v2522_v35 = vpop.eup %2521 }
 0x648   :  { %2525 = vrcp.f32 %v1137_v1  ;;  %v2524_v36 = vpop.eup %2523  ;;  %v1150_v12 = vadd.f32 1.0, %v2522_v35 }
 0x649   :  { %2527 = vrcp.f32 %v1143_v2 }
 0x64a   :  { %2529 = vrcp.f32 %v1150_v12 }
 0x652   :  { %v2526_v6 = vpop.eup %2525 }
 0x653   :  { %v2528_v32 = vpop.eup %2527  ;;  %v1157_v29 = vmul.f32 %v2526_v6, %v2524_v36 }
 0x654   :  { %v1156_v34 = vmul.f32 %v2528_v32, %v1154_v33  ;;  %v2530_v11 = vpop.eup %2529 }
 0x656   :  { %v3207_v37 = vadd.f32 %v1157_v29, %v1156_v34 }
 0x658   :  { %2531 = vtanh.f32 %v3207_v37  ;;  %v1283_v32 = vrot.slane %v3207_v37, 6  ;;  %v1420_v37 = vld [vmem:[%s3427_s5] sm:$0xf] }
 0x662   :  { %v2532_v13 = vpop.eup %2531 }
 0x663   :  { %v1160_v3 = vmul.f32 %v2532_v13, %v2530_v11 }
 0x665   :  { %v1161_v31 = vpack.c.bf16 %v1160_v3, %v1160_v3 }
 0x667   :  { %v1163_v7 = vrot.slane %v1161_v31, 1 }
 0x669   :  { %1198 = vmatmul.mubr.bf16.vlgmr.msra.gmra.mrb[28].mxu0 %v1163_v7  ;;  %1239 = vmatmul.mubr.bf16.vlgmr.msra.gmra.mrb[28].mxu1 %v1163_v7 }
 0x66a   :  { %1295 = vmatpush1.bf16.msra.mxu0 %v3154_v9  ;;  %1336 = vmatpush1.bf16.msra.mxu1 %v3157_v28  ;;  %v2653_v9 = vld [vmem:[#allocation2 + $0xc4] ss:$16 sps:$4 sm:$0xff]   ;;  %v2654_v28 = vld [vmem:[#allocation2 + $0xcc] ss:$16 sps:$4 sm:$0xff]  }
 0x66b   :  { %1296 = vmatprep.subr.bf16.mxu0 %v3160_v38  ;;  %1337 = vmatprep.subr.bf16.mxu1 %v3163_v39  ;;  %v2655_v38 = vld [vmem:[#allocation2 + $0xc0] ss:$16 sps:$4 sm:$0xff]   ;;  %v2656_v39 = vld [vmem:[#allocation2 + $0xc8] ss:$16 sps:$4 sm:$0xff]  }
 0x66c   :  { %1326 = vmatprep.mubr.bf16.mxu0 %v2712_v0  ;;  %1367 = vmatprep.mubr.bf16.mxu1 %v2712_v0 }
 0x66e   :  { %1297 = vmatpush1.bf16.msra.mxu0 %v3168_v40  ;;  %1338 = vmatpush1.bf16.msra.mxu1 %v3171_v41  ;;  %v2657_v40 = vld [vmem:[#allocation2 + $0xe4] ss:$16 sps:$4 sm:$0xff]   ;;  %v2658_v41 = vld [vmem:[#allocation2 + $0xec] ss:$16 sps:$4 sm:$0xff]  }
 0x66f   :  { %1298 = vmatprep.subr.bf16.mxu0 %v3174_v42  ;;  %1339 = vmatprep.subr.bf16.mxu1 %v2638_v16  ;;  %v2659_v42 = vld [vmem:[#allocation2 + $0xe0] ss:$16 sps:$4 sm:$0xff]  }
 0x672   :  { %1299 = vmatpush1.bf16.msra.mxu0 %v2639_v10  ;;  %1340 = vmatpush1.bf16.msra.mxu1 %v2640_v5  ;;  %v3231_v5 = vsel %vm165_vm0, %v1420_v37, 0 }
 0x673   :  { %1300 = vmatprep.subr.bf16.mxu0 %v2641_v27  ;;  %1341 = vmatprep.subr.bf16.mxu1 %v2642_v18  ;;  %v2429_v27 = vld [vmem:[%s3426_s4] sm:$0xff]   ;;  %v2714_v18 = vmov 0.0  }
 0x674   :  { %1535 = vst [vmem:[#allocation5] sm:$0x3] %v2714_v18  ;;  %1536 = vst [vmem:[#allocation5 + $0x2] sm:$0x3] %v2714_v18 }
 0x675   :  { %1537 = vst [vmem:[#allocation5 + $0x4] sm:$0x3] %v2714_v18  ;;  %1538 = vst [vmem:[#allocation5 + $0x6] sm:$0x3] %v2714_v18 }
 0x676   :  { %1301 = vmatpush1.bf16.msra.mxu0 %v2643_v19  ;;  %1342 = vmatpush1.bf16.msra.mxu1 %v2644_v22  ;;  %1539 = vst [vmem:[#allocation5 + $0x8] sm:$0x3] %v2714_v18  ;;  %1540 = vst [vmem:[#allocation5 + $0xa] sm:$0x3] %v2714_v18  ;;  %v2430_v19 = vld [vmem:[%s3426_s4 + $0x8] sm:$0xff]   ;;  %v2431_v22 = vld [vmem:[%s3426_s4 + $0x10] sm:$0xff]  }
 0x677   :  { %1302 = vmatprep.subr.bf16.mxu0 %v2645_v4  ;;  %1343 = vmatprep.subr.bf16.mxu1 %v2646_v24  ;;  %1541 = vst [vmem:[#allocation5 + $0xc] sm:$0x3] %v2714_v18  ;;  %1542 = vst [vmem:[#allocation5 + $0xe] sm:$0x3] %v2714_v18  ;;  %v2432_v4 = vld [vmem:[%s3426_s4 + $0x18] sm:$0xff]   ;;  %v2433_v24 = vld [vmem:[%s3426_s4 + $0x20] sm:$0xff]  }
 0x67a   :  { %1303 = vmatpush1.bf16.msra.mxu0 %v2647_v8  ;;  %1344 = vmatpush1.bf16.msra.mxu1 %v2648_v20  ;;  %v2434_v8 = vld [vmem:[%s3426_s4 + $0x28] sm:$0xff]   ;;  %v2435_v20 = vld [vmem:[%s3426_s4 + $0x30] sm:$0xff]  }
 0x67b   :  { %1304 = vmatprep.subr.bf16.mxu0 %v2649_v15  ;;  %1345 = vmatprep.subr.bf16.mxu1 %v2650_v30 }
 0x67e   :  { %1305 = vmatpush1.bf16.msra.mxu0 %v2651_v14  ;;  %1346 = vmatpush1.bf16.msra.mxu1 %v2652_v17 }
 0x67f   :  { %1306 = vmatprep.subr.bf16.mxu0 %v2653_v9  ;;  %1347 = vmatprep.subr.bf16.mxu1 %v2654_v28 }
 0x682   :  { %1307 = vmatpush1.bf16.msra.mxu0 %v2655_v38  ;;  %1348 = vmatpush1.bf16.msra.mxu1 %v2656_v39 }
 0x683   :  { %1308 = vmatprep.subr.bf16.mxu0 %v2657_v40  ;;  %1349 = vmatprep.subr.bf16.mxu1 %v2658_v41 }
 0x686   :  { %1309 = vmatpush1.bf16.msra.mxu0 %v2659_v42  ;;  %1350 = vmatpush1.bf16.msra.mxu1 %v2660_v43 }
 0x687   :  { %2296 = vmatprep.subr.bf16.mxu0 %v2714_v18  ;;  %2316 = vmatprep.subr.bf16.mxu1 %v2714_v18 }
 0x73c   :  { %v1199_v44 = vpop.f32.mrb[28].mxu0  ;;  %v1240_v45 = vpop.f32.mrb[28].mxu1 }
 0x73d   :  { %v1251_v46 = vrot.slane %v1199_v44, 4  ;;  %v1201_v47 = vpop.f32.mrb[29].mxu0  ;;  %v1242_v48 = vpop.f32.mrb[29].mxu1  ;;  %v1253_v60 = vrot.slane %v1240_v45, 4 }
 0x73e   :  { %v1252_v49 = vrot.slane %v1201_v47, 4  ;;  %v1203_v50 = vpop.f32.mrb[30].mxu0  ;;  %v1244_v51 = vpop.f32.mrb[30].mxu1  ;;  %v1254_v58 = vrot.slane %v1242_v48, 4 }
 0x73f   :  { %v1259_v52 = vadd.f32 %v1251_v46, %v2959_v21  ;;  %v1204_v53 = vpop.f32.mrb[31].mxu0  ;;  %v1245_v54 = vpop.f32.mrb[31].mxu1  ;;  %v1261_v62 = vadd.f32 %v1253_v60, %v2961_v23 }
 0x740   :  { %v1260_v55 = vadd.f32 %v1252_v49, %v2963_v25  ;;  %v1262_v59 = vadd.f32 %v1254_v58, %v2965_v26 }
 0x741   :  { %v2241_v56 = vmul.f32 -1.442695, %v1259_v52 }
 0x742   :  { %v2242_v57 = vmul.f32 -1.442695, %v1260_v55  ;;  %v2243_v61 = vmul.f32 -1.442695, %v1262_v59 }
 0x743   :  { %2533 = vpow2.f32 %v2241_v56 }
 0x744   :  { %2535 = vpow2.f32 %v2242_v57 }
 0x745   :  { %2537 = vpow2.f32 %v2243_v61 }
 0x746   :  { %2539 = vtanh.f32 %v1261_v62 }
 0x74d   :  { %v2534_v63 = vpop.eup %2533 }
 0x74e   :  { %v2536_v1 = vpop.eup %2535  ;;  %v1266_v2 = vadd.f32 1.0, %v2534_v63 }
 0x74f   :  { %v1272_v35 = vadd.f32 1.0, %v2536_v1  ;;  %v2538_v36 = vpop.eup %2537 }
 0x750   :  { %2541 = vrcp.f32 %v1266_v2  ;;  %v2540_v6 = vpop.eup %2539  ;;  %v1279_v34 = vadd.f32 1.0, %v2538_v36 }
 0x751   :  { %2543 = vrcp.f32 %v1272_v35 }
 0x752   :  { %2545 = vrcp.f32 %v1279_v34 }
 0x75a   :  { %v2542_v33 = vpop.eup %2541 }
 0x75b   :  { %v2544_v29 = vpop.eup %2543  ;;  %v1286_v12 = vmul.f32 %v2542_v33, %v2540_v6  ;;  %v2247_v33 = vld [vmem:[%s3428_s6] ss:$0 sm:$0xff]  ;;  %s2717_s6 = smov 8  }
 0x75c   :  { %v1285_v11 = vmul.f32 %v2544_v29, %v1283_v32  ;;  %v2546_v3 = vpop.eup %2545 }
 0x75e   :  { %v3224_v13 = vadd.f32 %v1286_v12, %v1285_v11 }
 0x760   :  { %2547 = vtanh.f32 %v3224_v13  ;;  %v1412_v56 = vrot.slane %v3224_v13, 6 }
 0x76a   :  { %v2548_v31 = vpop.eup %2547 }
 0x76b   :  { %v1289_v7 = vmul.f32 %v2548_v31, %v2546_v3 }
 0x76d   :  { %v1290_v16 = vpack.c.bf16 %v1289_v7, %v1289_v7 }
 0x76f   :  { %v1292_v10 = vrot.slane %v1290_v16, 2 }
 0x771   :  { %1327 = vmatmul.mubr.bf16.vlgmr.msra.gmra.mrb[32].mxu0 %v1292_v10  ;;  %1368 = vmatmul.mubr.bf16.vlgmr.msra.gmra.mrb[32].mxu1 %v1292_v10 }
 0x772   :  { %2297 = vmatpush3.bf16.msra.mxu0 %v2429_v27  ;;  %2317 = vmatpush3.bf16.msra.mxu1 %v3231_v5 }
 0x773   :  { %2298 = vmatprep.subr.bf16.mxu0 %v2714_v18  ;;  %2322 = vmatprep.subr.bf16.mxu1 %v2714_v18 }
 0x774   :  { %2318 = vmatprep.mubr.msk.bf16.mxu1 %vm2715_vm2, %v2714_v18  ;;  %2312 = vmatprep.mubr.msk.bf16.mxu0 %vm2715_vm2, %v2714_v18 }
 0x776   :  { %2299 = vmatpush3.bf16.msra.mxu0 %v2430_v19 }
 0x777   :  { %2300 = vmatprep.subr.bf16.mxu0 %v2714_v18 }
 0x779   :  { %2319 = vmatmul.mubr.bf16.vlgmr.msra.gmra.mrb[36].mxu1 %v2712_v0  ;;  %v2436_v0 = vld [vmem:[%s3426_s4 + $0x38] sm:$0xff]  }
 0x77a   :  { %2301 = vmatpush3.bf16.msra.mxu0 %v2431_v22  ;;  %2323 = vmatpush3.bf16.msra.mxu1 %v3231_v5 }
 0x77b   :  { %2302 = vmatprep.subr.bf16.mxu0 %v2714_v18  ;;  %2324 = vmatprep.mubr.msk.bf16.mxu1 %vm2715_vm2, %v2714_v18 }
 0x77c   :  { %2328 = vmatprep.subr.bf16.mxu1 %v2714_v18 }
 0x77e   :  { %2303 = vmatpush3.bf16.msra.mxu0 %v2432_v4 }
 0x77f   :  { %2304 = vmatprep.subr.bf16.mxu0 %v2714_v18 }
 0x782   :  { %2305 = vmatpush3.bf16.msra.mxu0 %v2433_v24 }
 0x783   :  { %2306 = vmatprep.subr.bf16.mxu0 %v2714_v18 }
 0x786   :  { %2307 = vmatpush3.bf16.msra.mxu0 %v2434_v8 }
 0x787   :  { %2308 = vmatprep.subr.bf16.mxu0 %v2714_v18 }
 0x78a   :  { %2309 = vmatpush3.bf16.msra.mxu0 %v2435_v20 }
 0x78b   :  { %2310 = vmatprep.subr.bf16.mxu0 %v2714_v18 }
 0x78e   :  { %2311 = vmatpush3.bf16.msra.mxu0 %v2436_v0 }
 0x78f   :  { %2340 = vmatprep.subr.bf16.mxu0 %v2714_v18 }
 0x844   :  { %v1328_v15 = vpop.f32.mrb[32].mxu0  ;;  %v1369_v30 = vpop.f32.mrb[32].mxu1 }
 0x845   :  { %v1380_v14 = vrot.slane %v1328_v15, 2  ;;  %v1330_v17 = vpop.f32.mrb[33].mxu0  ;;  %v1371_v9 = vpop.f32.mrb[33].mxu1  ;;  %v1382_v48 = vrot.slane %v1369_v30, 2 }
 0x846   :  { %v1381_v28 = vrot.slane %v1330_v17, 2  ;;  %v1332_v38 = vpop.f32.mrb[34].mxu0  ;;  %v1373_v39 = vpop.f32.mrb[34].mxu1  ;;  %v1383_v46 = vrot.slane %v1371_v9, 2 }
 0x847   :  { %v1388_v40 = vadd.f32 %v1380_v14, %v2959_v21  ;;  %v1333_v41 = vpop.f32.mrb[35].mxu0  ;;  %v1374_v42 = vpop.f32.mrb[35].mxu1  ;;  %v1390_v50 = vadd.f32 %v1382_v48, %v2961_v23 }
 0x848   :  { %v1389_v43 = vadd.f32 %v1381_v28, %v2963_v25  ;;  %v1391_v47 = vadd.f32 %v1383_v46, %v2965_v26 }
 0x849   :  { %v2244_v44 = vmul.f32 -1.442695, %v1388_v40 }
 0x84a   :  { %v2245_v45 = vmul.f32 -1.442695, %v1389_v43  ;;  %v2246_v49 = vmul.f32 -1.442695, %v1391_v47 }
 0x84b   :  { %2549 = vpow2.f32 %v2244_v44 }
 0x84c   :  { %2551 = vpow2.f32 %v2245_v45  ;;  %v1583_v2 = vpop.f32.mrb[36].mxu1 }
 0x84d   :  { %2553 = vpow2.f32 %v2246_v49  ;;  %v2320_v35 = vpop.f32.mrb[37].mxu1 }
 0x84e   :  { %2555 = vtanh.f32 %v1390_v50  ;;  %v1586_v36 = vpop.f32.mrb[38].mxu1 }
 0x84f   :  { %v2321_v6 = vpop.f32.mrb[39].mxu1 }
 0x855   :  { %v2550_v51 = vpop.eup %2549 }
 0x856   :  { %v2552_v52 = vpop.eup %2551  ;;  %v1395_v53 = vadd.f32 1.0, %v2550_v51 }
 0x857   :  { %v1401_v21 = vadd.f32 1.0, %v2552_v52  ;;  %v2554_v25 = vpop.eup %2553 }
 0x858   :  { %2557 = vrcp.f32 %v1395_v53  ;;  %v2556_v54 = vpop.eup %2555  ;;  %v1408_v26 = vadd.f32 1.0, %v2554_v25 }
 0x859   :  { %2559 = vrcp.f32 %v1401_v21 }
 0x85a   :  { %2561 = vrcp.f32 %v1408_v26 }
 0x862   :  { %v2558_v55 = vpop.eup %2557 }
 0x863   :  { %v2560_v57 = vpop.eup %2559  ;;  %v1415_v58 = vmul.f32 %v2558_v55, %v2556_v54 }
 0x864   :  { %v1414_v59 = vmul.f32 %v2560_v57, %v1412_v56  ;;  %v2562_v23 = vpop.eup %2561 }
 0x866   :  { %v1416_v60 = vadd.f32 %v1415_v58, %v1414_v59 }
 0x868   :  { %2563 = vtanh.f32 %v1416_v60 }
 0x872   :  { %v2564_v61 = vpop.eup %2563 }
 0x873   :  { %v1418_v62 = vmul.f32 %v2564_v61, %v2562_v23 }
 0x875   :  { %v1419_v63 = vpack.c.bf16 %v1418_v62, %v1418_v62 }
 0x877   :  { %v1445_v1 = vrot.slane %v1419_v63, 3 }
 0x879   :  { %2313 = vmatmul.mubr.bf16.vlgmr.msra.gmra.mrb[36].mxu0 %v1445_v1 }
 0x87a   :  { %2341 = vmatpush3.bf16.msra.mxu0 %v3231_v5  ;;  %2342 = vmatprep.mubr.msk.bf16.mxu0 %vm2715_vm2, %v2714_v18 }
 0x87b   :  { %2352 = vmatprep.subr.bf16.mxu0 %v2714_v18 }
 0x94c   :  { %v1529_v32 = vpop.f32.mrb[36].mxu0 }
 0x94d   :  { %v3298_v29 = vadd.f32 %v2247_v33, %v1529_v32  ;;  %v2314_v12 = vpop.f32.mrb[37].mxu0 }
 0x94e   :  { %v1532_v34 = vpop.f32.mrb[38].mxu0 }
 0x94f   :  { %v2315_v11 = vpop.f32.mrb[39].mxu0  ;;  %v1589_v13 = vadd.f32 %v1583_v2, %v3298_v29 }
 0x951   :  { %2565 = vtanh.f32 %v1589_v13  ;;  %v2256_v31 = vmul.f32 -1.442695, %v1589_v13 }
 0x953   :  { %2567 = vpow2.f32 %v2256_v31 }
 0x95b   :  { %v2566_v3 = vpop.eup %2565 }
 0x95c   :  { %1599 = vrot.lane.b32.xlu0 %v2566_v3, %s2716_s27 }
 0x95d   :  { %v2568_v7 = vpop.eup %2567 }
 0x95e   :  { %v1593_v16 = vadd.f32 1.0, %v2568_v7 }
 0x960   :  { %2569 = vrcp.f32 %v1593_v16 }
 0x96a   :  { %v2570_v10 = vpop.eup %2569 }
 0x96b   :  { %v1597_v19 = vmul.f32 0.0, %v2570_v10 }
 0x9ce   :  { %v1600_v37 = vpop.permute.xlu0 %1599 }
 0x9cf   :  { %v1602_v27 = vmul.f32 %v2570_v10, %v1600_v37 }
 0x9d1   :  { %1604 = vrot.lane.b32.xlu0 %v1602_v27, %s2717_s6 }
 0xa43   :  { %v1605_v22 = vpop.permute.xlu0 %1604 }
 0xa44   :  { %v1607_v4 = vadd.f32 %v1605_v22, %v1597_v19 }
 0xa46   :  { %2571 = vtanh.f32 %v1607_v4 }
 0xa50   :  { %v2572_v24 = vpop.eup %2571 }
 0xa51   :  { %1610 = vrot.lane.b32.xlu1 %v2572_v24, %s2711_s12 }
 0xac3   :  { %v1611_v8 = vpop.permute.xlu1 %1610 }
 0xac4   :  { %v3304_v20 = vmul.f32 %v2570_v10, %v1611_v8 }
 0xac6   :  { %v1620_v0 = vpack.c.bf16 %v3304_v20, %v3304_v20 }
 0xac8   :  { %1622 = vrot.lane.b32.xlu1 %v1620_v0, %s2718_s28 }
 0xb3a   :  { %v1623_v15 = vpop.permute.xlu1 %1622 }
 0xb3b   :  { %2325 = vmatmul.mubr.msk.bf16.vlgmr.msra.gmra.mrb[40].mxu1 %vm161_vm1, %v1623_v15 }
 0xb3c   :  { %2329 = vmatpush3.bf16.msra.mxu1 %v3231_v5  ;;  %2330 = vmatprep.mubr.msk.bf16.mxu1 %vm2715_vm2, %v2714_v18 }
 0xb3d   :  { %2334 = vmatprep.subr.bf16.mxu1 %v2714_v18 }
 0xc0e   :  { %v1661_v30 = vpop.f32.mrb[40].mxu1 }
 0xc0f   :  { %v1667_v14 = vadd.f32 %v1661_v30, %v3298_v29  ;;  %v2326_v17 = vpop.f32.mrb[41].mxu1 }
 0xc10   :  { %v1664_v9 = vpop.f32.mrb[42].mxu1 }
 0xc11   :  { %2573 = vtanh.f32 %v1667_v14  ;;  %v2327_v28 = vpop.f32.mrb[43].mxu1  ;;  %v2258_v39 = vmul.f32 -1.442695, %v1667_v14 }
 0xc13   :  { %2575 = vpow2.f32 %v2258_v39 }
 0xc1b   :  { %v2574_v38 = vpop.eup %2573 }
 0xc1c   :  { %1677 = vrot.lane.b32.xlu0 %v2574_v38, %s2716_s27 }
 0xc1d   :  { %v2576_v40 = vpop.eup %2575 }
 0xc1e   :  { %v1671_v41 = vadd.f32 1.0, %v2576_v40 }
 0xc20   :  { %2577 = vrcp.f32 %v1671_v41 }
 0xc2a   :  { %v2578_v42 = vpop.eup %2577 }
 0xc2b   :  { %v1675_v45 = vmul.f32 %v2578_v42, %v1607_v4 }
 0xc8e   :  { %v1678_v43 = vpop.permute.xlu0 %1677 }
 0xc8f   :  { %v1680_v44 = vmul.f32 %v2578_v42, %v1678_v43 }
 0xc91   :  { %1682 = vrot.lane.b32.xlu1 %v1680_v44, %s2717_s6 }
 0xd03   :  { %v1683_v46 = vpop.permute.xlu1 %1682 }
 0xd04   :  { %v1685_v47 = vadd.f32 %v1683_v46, %v1675_v45 }
 0xd06   :  { %2579 = vtanh.f32 %v1685_v47 }
 0xd10   :  { %v2580_v48 = vpop.eup %2579 }
 0xd11   :  { %1688 = vrot.lane.b32.xlu0 %v2580_v48, %s2711_s12 }
 0xd83   :  { %v1689_v49 = vpop.permute.xlu0 %1688 }
 0xd84   :  { %v3318_v50 = vmul.f32 %v2578_v42, %v1689_v49 }
 0xd86   :  { %v1698_v51 = vpack.c.bf16 %v3318_v50, %v3318_v50 }
 0xd88   :  { %1700 = vrot.lane.b32.xlu1 %v1698_v51, %s2718_s28 }
 0xdfa   :  { %v1701_v52 = vpop.permute.xlu1 %1700 }
 0xdfb   :  { %2331 = vmatmul.mubr.msk.bf16.vlgmr.msra.gmra.mrb[44].mxu1 %vm161_vm1, %v1701_v52 }
 0xdfc   :  { %2335 = vmatpush3.bf16.msra.mxu1 %v3231_v5  ;;  %2336 = vmatprep.mubr.msk.bf16.mxu1 %vm2715_vm2, %v2714_v18 }
 0xdfd   :  { %2346 = vmatprep.subr.bf16.mxu1 %v2714_v18 }
 0xece   :  { %v1739_v53 = vpop.f32.mrb[44].mxu1 }
 0xecf   :  { %v1745_v21 = vadd.f32 %v1739_v53, %v3298_v29  ;;  %v2332_v25 = vpop.f32.mrb[45].mxu1 }
 0xed0   :  { %v1742_v54 = vpop.f32.mrb[46].mxu1 }
 0xed1   :  { %2581 = vtanh.f32 %v1745_v21  ;;  %v2333_v55 = vpop.f32.mrb[47].mxu1  ;;  %v2260_v57 = vmul.f32 -1.442695, %v1745_v21 }
 0xed3   :  { %2583 = vpow2.f32 %v2260_v57 }
 0xedb   :  { %v2582_v56 = vpop.eup %2581 }
 0xedc   :  { %1755 = vrot.lane.b32.xlu0 %v2582_v56, %s2716_s27 }
 0xedd   :  { %v2584_v58 = vpop.eup %2583 }
 0xede   :  { %v1749_v26 = vadd.f32 1.0, %v2584_v58 }
 0xee0   :  { %2585 = vrcp.f32 %v1749_v26 }
 0xeea   :  { %v2586_v59 = vpop.eup %2585 }
 0xeeb   :  { %v1753_v61 = vmul.f32 %v2586_v59, %v1685_v47 }
 0xf4e   :  { %v1756_v60 = vpop.permute.xlu0 %1755 }
 0xf4f   :  { %v1758_v23 = vmul.f32 %v2586_v59, %v1756_v60 }
 0xf51   :  { %1760 = vrot.lane.b32.xlu1 %v1758_v23, %s2717_s6 }
 0xfc3   :  { %v1761_v62 = vpop.permute.xlu1 %1760 }
 0xfc4   :  { %v1763_v63 = vadd.f32 %v1761_v62, %v1753_v61 }
 0xfc6   :  { %2587 = vtanh.f32 %v1763_v63 }
 0xfd0   :  { %v2588_v1 = vpop.eup %2587 }
 0xfd1   :  { %1766 = vrot.lane.b32.xlu0 %v2588_v1, %s2711_s12 }
0x1043   :  { %v1767_v2 = vpop.permute.xlu0 %1766 }
0x1044   :  { %v3332_v35 = vmul.f32 %v2586_v59, %v1767_v2 }
0x1046   :  { %v1776_v36 = vpack.c.bf16 %v3332_v35, %v3332_v35 }
0x1048   :  { %1778 = vrot.lane.b32.xlu1 %v1776_v36, %s2718_s28 }
0x10ba   :  { %v1779_v6 = vpop.permute.xlu1 %1778 }
0x10bb   :  { %2337 = vmatmul.mubr.msk.bf16.vlgmr.msra.gmra.mrb[48].mxu1 %vm161_vm1, %v1779_v6 }
0x10bc   :  { %2347 = vmatpush3.bf16.msra.mxu1 %v3231_v5  ;;  %2348 = vmatprep.mubr.msk.bf16.mxu1 %vm2715_vm2, %v2714_v18 }
0x10bd   :  { %2358 = vmatprep.subr.bf16.mxu1 %v2714_v18 }
0x118e   :  { %v1817_v33 = vpop.f32.mrb[48].mxu1 }
0x118f   :  { %v1823_v32 = vadd.f32 %v1817_v33, %v3298_v29  ;;  %v2338_v12 = vpop.f32.mrb[49].mxu1 }
0x1190   :  { %v1820_v34 = vpop.f32.mrb[50].mxu1 }
0x1191   :  { %2589 = vtanh.f32 %v1823_v32  ;;  %v2339_v11 = vpop.f32.mrb[51].mxu1  ;;  %v2262_v3 = vmul.f32 -1.442695, %v1823_v32 }
0x1193   :  { %2591 = vpow2.f32 %v2262_v3 }
0x119b   :  { %v2590_v13 = vpop.eup %2589 }
0x119c   :  { %1833 = vrot.lane.b32.xlu0 %v2590_v13, %s2716_s27 }
0x119d   :  { %v2592_v31 = vpop.eup %2591 }
0x119e   :  { %v1827_v7 = vadd.f32 1.0, %v2592_v31 }
0x11a0   :  { %2593 = vrcp.f32 %v1827_v7 }
0x11aa   :  { %v2594_v16 = vpop.eup %2593 }
0x11ab   :  { %v1831_v27 = vmul.f32 %v2594_v16, %v1763_v63 }
0x120e   :  { %v1834_v10 = vpop.permute.xlu0 %1833 }
0x120f   :  { %v1836_v37 = vmul.f32 %v2594_v16, %v1834_v10 }
0x1211   :  { %1838 = vrot.lane.b32.xlu1 %v1836_v37, %s2717_s6 }
0x1283   :  { %v1839_v19 = vpop.permute.xlu1 %1838 }
0x1284   :  { %v1841_v22 = vadd.f32 %v1839_v19, %v1831_v27 }
0x1286   :  { %2595 = vtanh.f32 %v1841_v22 }
0x1290   :  { %v2596_v4 = vpop.eup %2595 }
0x1291   :  { %1844 = vrot.lane.b32.xlu0 %v2596_v4, %s2711_s12 }
0x1303   :  { %v1845_v24 = vpop.permute.xlu0 %1844 }
0x1304   :  { %v3346_v8 = vmul.f32 %v2594_v16, %v1845_v24 }
0x1306   :  { %v1854_v0 = vpack.c.bf16 %v3346_v8, %v3346_v8 }
0x1308   :  { %1856 = vrot.lane.b32.xlu1 %v1854_v0, %s2718_s28 }
0x137a   :  { %v1857_v15 = vpop.permute.xlu1 %1856 }
0x137b   :  { %2343 = vmatmul.mubr.msk.bf16.vlgmr.msra.gmra.mrb[40].mxu0 %vm161_vm1, %v1857_v15 }
0x137c   :  { %2353 = vmatpush3.bf16.msra.mxu0 %v3231_v5  ;;  %2354 = vmatprep.mubr.msk.bf16.mxu0 %vm2715_vm2, %v2714_v18 }
0x144e   :  { %v1895_v30 = vpop.f32.mrb[40].mxu0 }
0x144f   :  { %v1901_v14 = vadd.f32 %v1895_v30, %v3298_v29  ;;  %v2344_v17 = vpop.f32.mrb[41].mxu0 }
0x1450   :  { %v1898_v9 = vpop.f32.mrb[42].mxu0 }
0x1451   :  { %2597 = vtanh.f32 %v1901_v14  ;;  %v2345_v28 = vpop.f32.mrb[43].mxu0  ;;  %v2264_v39 = vmul.f32 -1.442695, %v1901_v14 }
0x1453   :  { %2599 = vpow2.f32 %v2264_v39 }
0x145b   :  { %v2598_v38 = vpop.eup %2597 }
0x145c   :  { %1911 = vrot.lane.b32.xlu0 %v2598_v38, %s2716_s27 }
0x145d   :  { %v2600_v40 = vpop.eup %2599 }
0x145e   :  { %v1905_v41 = vadd.f32 1.0, %v2600_v40 }
0x1460   :  { %2601 = vrcp.f32 %v1905_v41 }
0x146a   :  { %v2602_v42 = vpop.eup %2601 }
0x146b   :  { %v1909_v45 = vmul.f32 %v2602_v42, %v1841_v22 }
0x14ce   :  { %v1912_v43 = vpop.permute.xlu0 %1911 }
0x14cf   :  { %v1914_v44 = vmul.f32 %v2602_v42, %v1912_v43 }
0x14d1   :  { %1916 = vrot.lane.b32.xlu1 %v1914_v44, %s2717_s6 }
0x1543   :  { %v1917_v46 = vpop.permute.xlu1 %1916 }
0x1544   :  { %v1919_v47 = vadd.f32 %v1917_v46, %v1909_v45 }
0x1546   :  { %2603 = vtanh.f32 %v1919_v47 }
0x1550   :  { %v2604_v48 = vpop.eup %2603 }
0x1551   :  { %1922 = vrot.lane.b32.xlu0 %v2604_v48, %s2711_s12 }
0x15c3   :  { %v1923_v49 = vpop.permute.xlu0 %1922 }
0x15c4   :  { %v3359_v51 = vmul.f32 %v2602_v42, %v1923_v49 }
0x15c6   :  { %v1932_v52 = vpack.c.bf16 %v3359_v51, %v3359_v51 }
0x15c8   :  { %1934 = vrot.lane.b32.xlu1 %v1932_v52, %s2718_s28 }
0x163a   :  { %v1935_v53 = vpop.permute.xlu1 %1934 }
0x163b   :  { %2349 = vmatmul.mubr.msk.bf16.vlgmr.msra.gmra.mrb[52].mxu1 %vm161_vm1, %v1935_v53 }
0x163c   :  { %2359 = vmatpush3.bf16.msra.mxu1 %v3231_v5  ;;  %2360 = vmatprep.mubr.msk.bf16.mxu1 %vm2715_vm2, %v2714_v18 }
0x170e   :  { %v1973_v21 = vpop.f32.mrb[52].mxu1 }
0x170f   :  { %v1979_v25 = vadd.f32 %v1973_v21, %v3298_v29  ;;  %v2350_v54 = vpop.f32.mrb[53].mxu1 }
0x1710   :  { %v1976_v55 = vpop.f32.mrb[54].mxu1 }
0x1711   :  { %2605 = vtanh.f32 %v1979_v25  ;;  %v2351_v56 = vpop.f32.mrb[55].mxu1  ;;  %v2266_v58 = vmul.f32 -1.442695, %v1979_v25 }
0x1713   :  { %2607 = vpow2.f32 %v2266_v58 }
0x171b   :  { %v2606_v57 = vpop.eup %2605 }
0x171c   :  { %1989 = vrot.lane.b32.xlu0 %v2606_v57, %s2716_s27 }
0x171d   :  { %v2608_v26 = vpop.eup %2607 }
0x171e   :  { %v1983_v59 = vadd.f32 1.0, %v2608_v26 }
0x1720   :  { %2609 = vrcp.f32 %v1983_v59 }
0x172a   :  { %v2610_v60 = vpop.eup %2609 }
0x172b   :  { %v1987_v18 = vmul.f32 %v2610_v60, %v1919_v47 }
0x178e   :  { %v1990_v5 = vpop.permute.xlu0 %1989 }
0x178f   :  { %v1992_v23 = vmul.f32 %v2610_v60, %v1990_v5 }
0x1791   :  { %1994 = vrot.lane.b32.xlu1 %v1992_v23, %s2717_s6 }
0x1803   :  { %v1995_v61 = vpop.permute.xlu1 %1994 }
0x1804   :  { %v1997_v62 = vadd.f32 %v1995_v61, %v1987_v18 }
0x1806   :  { %2611 = vtanh.f32 %v1997_v62 }
0x1810   :  { %v2612_v63 = vpop.eup %2611 }
0x1811   :  { %2000 = vrot.lane.b32.xlu0 %v2612_v63, %s2711_s12 }
0x1883   :  { %v2001_v1 = vpop.permute.xlu0 %2000 }
0x1884   :  { %v3372_v2 = vmul.f32 %v2610_v60, %v2001_v1 }
0x1886   :  { %v2010_v36 = vpack.c.bf16 %v3372_v2, %v3372_v2 }
0x1888   :  { %2012 = vrot.lane.b32.xlu1 %v2010_v36, %s2718_s28 }
0x18fa   :  { %v2013_v6 = vpop.permute.xlu1 %2012 }
0x18fb   :  { %2355 = vmatmul.mubr.msk.bf16.vlgmr.msra.gmra.mrb[44].mxu0 %vm161_vm1, %v2013_v6 }
0x19ce   :  { %v2051_v33 = vpop.f32.mrb[44].mxu0 }
0x19cf   :  { %v2057_v32 = vadd.f32 %v2051_v33, %v3298_v29  ;;  %v2356_v12 = vpop.f32.mrb[45].mxu0 }
0x19d0   :  { %v2054_v34 = vpop.f32.mrb[46].mxu0 }
0x19d1   :  { %2613 = vtanh.f32 %v2057_v32  ;;  %v2357_v11 = vpop.f32.mrb[47].mxu0  ;;  %v2268_v3 = vmul.f32 -1.442695, %v2057_v32 }
0x19d3   :  { %2615 = vpow2.f32 %v2268_v3 }
0x19db   :  { %v2614_v13 = vpop.eup %2613 }
0x19dc   :  { %2067 = vrot.lane.b32.xlu0 %v2614_v13, %s2716_s27 }
0x19dd   :  { %v2616_v31 = vpop.eup %2615 }
0x19de   :  { %v2061_v7 = vadd.f32 1.0, %v2616_v31 }
0x19e0   :  { %2617 = vrcp.f32 %v2061_v7 }
0x19ea   :  { %v2618_v16 = vpop.eup %2617 }
0x19eb   :  { %v2065_v27 = vmul.f32 %v2618_v16, %v1997_v62 }
0x1a4e   :  { %v2068_v10 = vpop.permute.xlu0 %2067 }
0x1a4f   :  { %v2070_v37 = vmul.f32 %v2618_v16, %v2068_v10 }
0x1a51   :  { %2072 = vrot.lane.b32.xlu1 %v2070_v37, %s2717_s6 }
0x1ac3   :  { %v2073_v19 = vpop.permute.xlu1 %2072 }
0x1ac4   :  { %v2075_v22 = vadd.f32 %v2073_v19, %v2065_v27 }
0x1ac6   :  { %2619 = vtanh.f32 %v2075_v22 }
0x1ad0   :  { %v2620_v4 = vpop.eup %2619 }
0x1ad1   :  { %2078 = vrot.lane.b32.xlu0 %v2620_v4, %s2711_s12 }
0x1b43   :  { %v2079_v24 = vpop.permute.xlu0 %2078 }
0x1b44   :  { %v2081_v0 = vmul.f32 %v2618_v16, %v2079_v24 }
0x1b46   :  { %v2088_v15 = vpack.c.bf16 %v2081_v0, %v2081_v0 }
0x1b48   :  { %2090 = vrot.lane.b32.xlu1 %v2088_v15, %s2718_s28 }
0x1bba   :  { %v2091_v30 = vpop.permute.xlu1 %2090 }
0x1bbb   :  { %2361 = vmatmul.mubr.msk.bf16.vlgmr.msra.gmra.mrb[56].mxu1 %vm161_vm1, %v2091_v30 }
0x1c8e   :  { %v2129_v14 = vpop.f32.mrb[56].mxu1 }
0x1c8f   :  { %v2135_v17 = vadd.f32 %v2129_v14, %v3298_v29  ;;  %v2362_v9 = vpop.f32.mrb[57].mxu1 }
0x1c90   :  { %v2132_v28 = vpop.f32.mrb[58].mxu1 }
0x1c91   :  { %2621 = vtanh.f32 %v2135_v17  ;;  %v2363_v38 = vpop.f32.mrb[59].mxu1  ;;  %v2270_v40 = vmul.f32 -1.442695, %v2135_v17 }
0x1c93   :  { %2623 = vpow2.f32 %v2270_v40 }
0x1c9b   :  { %v2622_v39 = vpop.eup %2621 }
0x1c9c   :  { %2145 = vrot.lane.b32.xlu0 %v2622_v39, %s2716_s27 }
0x1c9d   :  { %v2624_v41 = vpop.eup %2623 }
0x1c9e   :  { %v2139_v42 = vadd.f32 1.0, %v2624_v41 }
0x1ca0   :  { %2625 = vrcp.f32 %v2139_v42 }
0x1caa   :  { %v2626_v43 = vpop.eup %2625 }
0x1cab   :  { %v2143_v29 = vmul.f32 %v2626_v43, %v2075_v22 }
0x1d0e   :  { %v2146_v44 = vpop.permute.xlu0 %2145 }
0x1d0f   :  { %v2148_v45 = vmul.f32 %v2626_v43, %v2146_v44 }
0x1d11   :  { %2150 = vrot.lane.b32.xlu1 %v2148_v45, %s2717_s6 }
0x1d15   :  { %1615 = vrot.lane.b32.xlu1 %v3304_v20, %s2718_s28 }
0x1d19   :  { %1771 = vrot.lane.b32.xlu1 %v3332_v35, %s2718_s28 }
0x1d1d   :  { %1927 = vrot.lane.b32.xlu1 %v3359_v51, %s2718_s28 }
0x1d21   :  { %2083 = vrot.lane.b32.xlu1 %v2081_v0, %s2718_s28 }
0x1d83   :  { %v2151_v46 = vpop.permute.xlu1 %2150 }
0x1d84   :  { %v2153_v47 = vadd.f32 %v2151_v46, %v2143_v29 }
0x1d86   :  { %2627 = vtanh.f32 %v2153_v47 }
0x1d87   :  { %v1616_v48 = vpop.permute.xlu1 %1615 }
0x1d88   :  { %1619 = vst.msk [vmem:[#allocation5] sm:$0x3] %vm1618_vm3, %v1616_v48 }
0x1d8b   :  { %v1772_v49 = vpop.permute.xlu1 %1771 }
0x1d8c   :  { %1775 = vst.msk [vmem:[#allocation5 + $0x4] sm:$0x3] %vm1618_vm3, %v1772_v49 }
0x1d8f   :  { %v1928_v20 = vpop.permute.xlu1 %1927 }
0x1d90   :  { %v2628_v52 = vpop.eup %2627  ;;  %1931 = vst.msk [vmem:[#allocation5 + $0x8] sm:$0x3] %vm1618_vm3, %v1928_v20 }
0x1d91   :  { %2156 = vrot.lane.b32.xlu0 %v2628_v52, %s2711_s12  ;;  %s2719_s12 = smov [#allocation5]  }
0x1d92   :  { %s2171_s29 = sshll.u32 %s2719_s12, 4  ;;  %s2172_s29 = int_to_ptr.vmem [resolvable:$true] %s2171_s29 }
0x1d93   :  { %v2084_v35 = vpop.permute.xlu1 %2083  ;;  %s2683_s30 = scalar_lea.vmem %s2172_s29, 256  ;;  %p2688_p9 = scmp.lt.s32.totalorder %s2172_s29, %s2172_s29 }
0x1d94   :  { %2087 = vst.msk [vmem:[#allocation5 + $0xc] sm:$0x3] %vm1618_vm3, %v2084_v35  ;;  %p2684_p8 = scmp.ne.s32.totalorder %s2172_s29, %s2683_s30  ;;  %p2689_p10 = scmp.lt.s32.totalorder %s2683_s30, %s2683_s30 }
0x1d95   :  { %1693 = vrot.lane.b32.xlu0 %v3318_v50, %s2718_s28 }
0x1d96   :  { %p2690_p11 = por %p2689_p10, %p2688_p9 }
0x1d98   :  { %p2691_p12 = pnand %p2690_p11, %p2684_p8 }
0x1d99   :  { %1849 = vrot.lane.b32.xlu0 %v3346_v8, %s2718_s28 }
0x1d9d   :  { %2005 = vrot.lane.b32.xlu0 %v3372_v2, %s2718_s28 }
0x1e03   :  { %v2157_v51 = vpop.permute.xlu0 %2156 }
0x1e04   :  { %v2159_v53 = vmul.f32 %v2626_v43, %v2157_v51 }
0x1e06   :  { %2161 = vrot.lane.b32.xlu0 %v2159_v53, %s2718_s28 }
0x1e07   :  { %v1694_v21 = vpop.permute.xlu0 %1693 }
0x1e08   :  { %1697 = vst.msk [vmem:[#allocation5 + $0x2] sm:$0x3] %vm1618_vm3, %v1694_v21 }
0x1e0b   :  { %v1850_v25 = vpop.permute.xlu0 %1849 }
0x1e0c   :  { %1853 = vst.msk [vmem:[#allocation5 + $0x6] sm:$0x3] %vm1618_vm3, %v1850_v25 }
0x1e0f   :  { %v2006_v54 = vpop.permute.xlu0 %2005 }
0x1e10   :  { %2009 = vst.msk [vmem:[#allocation5 + $0xa] sm:$0x3] %vm1618_vm3, %v2006_v54 }
0x1e78   :  { %v2162_v50 = vpop.permute.xlu0 %2161 }
0x1e79   :  { %2165 = vst.msk [vmem:[#allocation5 + $0xe] sm:$0x3] %vm1618_vm3, %v2162_v50 }
0x1e7a   :  { %2694 = shalt.err (!%p2691_p12)
}
0x1e7b   :  { %s2695_s0 = scalar_lea.hbm %s3429_s7, 256 }
0x1e7c   :  { %p2696_p13 = scmp.ne.s32.totalorder %s3429_s7, %s2695_s0  ;;  %p2699_p0 = scmp.lt.u32.totalorder %s2695_s0, %s3429_s7 }
0x1e7e   :  { %p2701_p1 = pnand %p2699_p0, %p2696_p13 }
0x1e80   :  { %2704 = shalt.err (!%p2701_p1)
}
0x1e81   :  { %s2720_s14 = smov 32   ;;  %s2721_s5 = smov 2  }
0x1e82   :  { %2177 = dma.vmem_to_hbm [thread:$0]  %s2172_s29, 256, %s3429_s7, [#allocation4], %s2720_s14, %s2720_s14, %s2721_s5  }
0x1e83   :  { %2707 = dma.done.wait [#allocation4], 256  }
0x1e84   :  { %2708 = vsyncadd [#allocation4], 4294967040 }
0x1e85   :  { %2181 = vsyncpa [#allocation3], 1 }
0x1e86   :  { %2182 = vsyncpa [#allocation4], 1 }

</bundles_post_ra>
